<compile_context>
chip_gen: v7x
topology: tpu7x:2x2x1
jax: 0.10.0
libtpu: 0.0.40
codegen_flags: <defaults>
</compile_context>

<pallas_src>
import functools
import math

import jax
import jax.numpy as jnp
from jax.experimental import pallas as pl
from jax.experimental.pallas import tpu as pltpu


_TRANSPOSE_CHUNK = 2048      # lanes transposed per in-kernel chunk (bounds live values)
_VMEM_HEADROOM = 8 << 20     # slack under vmem_limit for compiler-internal scratch


def _round_up(x, m):
    return (x + m - 1) // m * m


def _cdiv(a, b):
    return (a + b - 1) // b


def _vmem_bytes(bt, c, ts, itemsize, g):
    """VMEM needed for one grid step: double-buffered in/out tiles (+ scratch)."""
    in_t = bt * _round_up(c, 8) * _round_up(ts, 128) * itemsize
    if g is None:                       # plain path: out tile (bt, ts, c)
        out_t = bt * _round_up(ts, 8) * _round_up(c, 128) * itemsize
        scratch = 0
    else:                               # lane-dense path: out (bt, ts//g, g*c) + scratch (bt, ts, c)
        out_t = bt * _round_up(ts // g, 8) * _round_up(g * c, 128) * itemsize
        scratch = bt * _round_up(ts, 8) * _round_up(c, 128) * itemsize
    return 2 * (in_t + out_t) + scratch


def _largest_divisor_leq(n, cap):
    cap = max(1, min(n, int(cap)))
    for d in range(cap, 0, -1):
        if n % d == 0:
            return d
    return 1


def _s_tile_candidates(s):
    """S-tile candidates, largest first: S itself, multiple-of-128 divisors of S,
    then (ragged / clamped last block) multiples of 128 that do not divide S."""
    cands = [s]
    top = 128 * (s // 128)
    for t in range(top, 0, -128):
        if s % t == 0:
            cands.append(t)
    for t in range(top, 0, -128):
        if s % t != 0:
            cands.append(t)
    seen, out = set(), []
    for t in cands:
        if t not in seen:
            seen.add(t)
            out.append(t)
    return out


def _lane_dense_ok(ts, s, g):
    """Block-shape legality for the lane-dense output tile (bt, ts//g, g*C)."""
    if ts % g != 0:
        return False
    rg = ts // g
    return rg % 8 == 0 or rg == s // g


# ----------------------------------------------------------------------------- kernels


def _transpose_minor_into(dst_ref, src_ref, ts):
    """dst[:, s, c] = src[:, c, s]; chunked along s to bound live vector values."""
    j = 0
    while j < ts:
        n = min(_TRANSPOSE_CHUNK, ts - j)
        dst_ref[:, j:j + n, :] = jnp.swapaxes(src_ref[:, :, j:j + n], -1, -2)
        j += n


def _relayout_plain_kernel(x_ref, o_ref, *, ts):
    # x_ref: (bt, C, ts) -> o_ref: (bt, ts, C).  Used when C is already a
    # multiple of 128 (output is lane-dense as-is) or as a structural fallback.
    _transpose_minor_into(o_ref, x_ref, ts)


def _relayout_lane_dense_kernel(x_ref, o_ref, t_ref, *, c, g, ts):
    # x_ref: (bt, C, ts), t_ref (scratch): (bt, ts, C), o_ref: (bt, ts//g, g*C).
    rg = ts // g
    _transpose_minor_into(t_ref, x_ref, ts)
    # Regroup g consecutive spatial positions into one lane-dense output row:
    #   o[b, r, k*C:(k+1)*C] = t[b, r*g + k, :]
    for k in range(g):
        o_ref[:, :, k * c:(k + 1) * c] = t_ref[:, pl.ds(k, rg, stride=g), :]


# ----------------------------------------------------------------------------- wrapper


def relayout_contiguous_permute_nchw_to_nhwc(x):
    """Equivalent of RelayoutContiguousOp('permute')(x, 0, 2, 3, 1).contiguous().

    x: (N, C, H, W)  ->  (N, H, W, C), contiguous.
    """
    N, C, H, W = x.shape
    S = H * W
    itemsize = jnp.dtype(x.dtype).itemsize
    x2 = x.reshape(N, C, S)                      # free view of the contiguous input

    # --- generation-aware VMEM budget ---------------------------------------
    try:
        vmem_cap = int(pltpu.get_tpu_info().vmem_capacity_bytes)
    except Exception:
        vmem_cap = 64 << 20                      # conservative (v7x-sized) fallback
    if vmem_cap >= (96 << 20):                   # v5e / v6e: 128 MiB physical
        vmem_limit = 80 << 20
    else:                                        # v7x: 64 MiB physical per TC
        vmem_limit = min(48 << 20, max(16 << 20, vmem_cap - (16 << 20)))
    budget = vmem_limit - _VMEM_HEADROOM

    # --- lane-dense output grouping ------------------------------------------
    g = None
    if C % 128 != 0:
        cand_g = math.lcm(C, 128) // C
        if S % cand_g == 0:
            g = cand_g

    # --- choose the S tile (prefer ts == S) -----------------------------------
    cands = _s_tile_candidates(S)
    ts = None
    for cand in cands:
        if g is not None and not _lane_dense_ok(cand, S, g):
            continue
        if _vmem_bytes(1, C, cand, itemsize, g) <= budget:
            ts = cand
            break
    if ts is None and g is not None:             # retry without lane-dense packing
        g = None
        for cand in cands:
            if _vmem_bytes(1, C, cand, itemsize, None) <= budget:
                ts = cand
                break
    if ts is None:                               # last resort (very large C)
        g = None
        ts = min(S, 128)

    # --- choose the batch block ------------------------------------------------
    bt = 1
    for d in range(N, 0, -1):
        if N % d == 0 and _vmem_bytes(d, C, ts, itemsize, g) <= budget:
            bt = d
            break

    # --- guarantee enough grid steps (megacore / pipelining) -------------------
    total_bytes = 2 * N * C * S * itemsize
    target = 4 if total_bytes >= (4 << 20) else 2
    while bt > 1 and (N // bt) * _cdiv(S, ts) < target:
        bt = _largest_divisor_leq(N, bt - 1)
    if (N // bt) * _cdiv(S, ts) < target:        # N alone is not enough: split S
        for cand in cands:
            if cand >= ts or (N // bt) * _cdiv(S, cand) < target:
                continue
            if g is not None and not _lane_dense_ok(cand, S, g):
                continue
            if _vmem_bytes(bt, C, cand, itemsize, g) <= budget:
                ts = cand
                break

    grid = (N // bt, _cdiv(S, ts))

    # --- specs / kernel ---------------------------------------------------------
    in_spec = pl.BlockSpec((bt, C, ts), lambda b, s: (b, 0, s))
    if g is None:
        out_shape = jax.ShapeDtypeStruct((N, S, C), x.dtype)
        out_spec = pl.BlockSpec((bt, ts, C), lambda b, s: (b, s, 0))
        scratch_shapes = ()
        kernel = functools.partial(_relayout_plain_kernel, ts=ts)
    else:
        out_shape = jax.ShapeDtypeStruct((N, S // g, g * C), x.dtype)
        out_spec = pl.BlockSpec((bt, ts // g, g * C), lambda b, s: (b, s, 0))
        scratch_shapes = (pltpu.VMEM((bt, ts, C), x.dtype),)
        kernel = functools.partial(_relayout_lane_dense_kernel, c=C, g=g, ts=ts)

    out = pl.pallas_call(
        kernel,
        out_shape=out_shape,
        grid_spec=pltpu.PrefetchScalarGridSpec(
            num_scalar_prefetch=0,
            grid=grid,
            in_specs=[in_spec],
            out_specs=out_spec,
            scratch_shapes=scratch_shapes,
        ),
        compiler_params=pltpu.CompilerParams(
            dimension_semantics=("parallel", "parallel"),
            vmem_limit_bytes=int(vmem_limit),
        ),
        cost_estimate=pl.CostEstimate(
            flops=0, transcendentals=0, bytes_accessed=total_bytes),
    )(x2)

    # (N, S//g, g*C) / (N, S, C) and (N, H, W, C) are the same contiguous bytes,
    # so this reshape is free.
    return out.reshape(N, H, W, C)


if __name__ == "__main__":
    k1, k2 = jax.random.split(jax.random.PRNGKey(0))

    # Case 1: small conv-feature shape (lane-dense path, g = 32, bt = 1).
    x_small = jax.random.normal(k1, (2, 4, 16, 16), dtype=jnp.float32)
    # Case 2: slightly larger shape (lane-dense path, g = 16, bt > 1).
    x_large = jax.random.normal(k2, (4, 8, 32, 32), dtype=jnp.float32)

    for x in (x_small, x_large):
        out = jax.block_until_ready(relayout_contiguous_permute_nchw_to_nhwc(x))
        # Reference: permute(0, 2, 3, 1).contiguous() — pure movement, bit-exact.
        ref = jnp.transpose(x, (0, 2, 3, 1))
        assert out.shape == ref.shape, (out.shape, ref.shape)
        assert out.dtype == ref.dtype
        assert bool(jnp.all(out == ref))

    print("KERNEL_OK")
</pallas_src>

<mosaic_0001>
module attributes {stable_mosaic.version = 11 : i64} {
  func.func @_relayout_lane_dense_kernel(%arg0: i32, %arg1: i32, %arg2: memref<1x4x256xf32, #tpu.memory_space<vmem>>, %arg3: memref<1x8x128xf32, #tpu.memory_space<vmem>>, %arg4: memref<1x256x4xf32, #tpu.memory_space<vmem>>) attributes {dimension_semantics = [#tpu.dimension_semantics<parallel>, #tpu.dimension_semantics<parallel>], iteration_bounds = array<i64: 2, 1>, scalar_prefetch = 0 : i64, scratch_operands = 1 : i64, tpu.core_type = #tpu.core_type<tc>, window_params = [{transform_indices = @transform_0, window_bounds = array<i64: 1, 4, 256>}, {transform_indices = @transform_1, window_bounds = array<i64: 1, 8, 128>}]} {
    %c0 = arith.constant 0 : index
    %c0_0 = arith.constant 0 : index
    %c0_1 = arith.constant 0 : index
    %0 = vector.load %arg2[%c0, %c0_0, %c0_1] : memref<1x4x256xf32, #tpu.memory_space<vmem>>, vector<1x4x256xf32>
    %1 = tpu.transpose %0, [0, 2, 1] : vector<1x4x256xf32> -> vector<1x256x4xf32>
    %c0_2 = arith.constant 0 : index
    %c0_3 = arith.constant 0 : index
    %c0_4 = arith.constant 0 : index
    %2 = vector.load %arg4[%c0_2, %c0_3, %c0_4] : memref<1x256x4xf32, #tpu.memory_space<vmem>>, vector<1x256x4xf32>
    tpu.vector_store %arg4[%c0_2, %c0_3, %c0_4], %1 {strides = array<i32>} : memref<1x256x4xf32, #tpu.memory_space<vmem>>, vector<1x256x4xf32>,
    %c0_5 = arith.constant 0 : index
    %c0_6 = arith.constant 0 : index
    %c0_7 = arith.constant 0 : index
    %3 = tpu.strided_load %arg4[%c0_5, %c0_6, %c0_7] {strides = array<i32: 1, 32, 1>} : memref<1x256x4xf32, #tpu.memory_space<vmem>>, vector<1x8x4xf32>
    %c0_8 = arith.constant 0 : index
    %c0_9 = arith.constant 0 : index
    %c0_10 = arith.constant 0 : index
    %4 = vector.load %arg3[%c0_8, %c0_9, %c0_10] : memref<1x8x128xf32, #tpu.memory_space<vmem>>, vector<1x8x4xf32>
    tpu.vector_store %arg3[%c0_8, %c0_9, %c0_10], %3 {strides = array<i32>} : memref<1x8x128xf32, #tpu.memory_space<vmem>>, vector<1x8x4xf32>,
    %c0_11 = arith.constant 0 : index
    %c1 = arith.constant 1 : index
    %c0_12 = arith.constant 0 : index
    %5 = tpu.strided_load %arg4[%c0_11, %c1, %c0_12] {strides = array<i32: 1, 32, 1>} : memref<1x256x4xf32, #tpu.memory_space<vmem>>, vector<1x8x4xf32>
    %c0_13 = arith.constant 0 : index
    %c0_14 = arith.constant 0 : index
    %c4 = arith.constant 4 : index
    %6 = vector.load %arg3[%c0_13, %c0_14, %c4] : memref<1x8x128xf32, #tpu.memory_space<vmem>>, vector<1x8x4xf32>
    tpu.vector_store %arg3[%c0_13, %c0_14, %c4], %5 {strides = array<i32>} : memref<1x8x128xf32, #tpu.memory_space<vmem>>, vector<1x8x4xf32>,
    %c0_15 = arith.constant 0 : index
    %c2 = arith.constant 2 : index
    %c0_16 = arith.constant 0 : index
    %7 = tpu.strided_load %arg4[%c0_15, %c2, %c0_16] {strides = array<i32: 1, 32, 1>} : memref<1x256x4xf32, #tpu.memory_space<vmem>>, vector<1x8x4xf32>
    %c0_17 = arith.constant 0 : index
    %c0_18 = arith.constant 0 : index
    %c8 = arith.constant 8 : index
    %8 = vector.load %arg3[%c0_17, %c0_18, %c8] : memref<1x8x128xf32, #tpu.memory_space<vmem>>, vector<1x8x4xf32>
    tpu.vector_store %arg3[%c0_17, %c0_18, %c8], %7 {strides = array<i32>} : memref<1x8x128xf32, #tpu.memory_space<vmem>>, vector<1x8x4xf32>,
    %c0_19 = arith.constant 0 : index
    %c3 = arith.constant 3 : index
    %c0_20 = arith.constant 0 : index
    %9 = tpu.strided_load %arg4[%c0_19, %c3, %c0_20] {strides = array<i32: 1, 32, 1>} : memref<1x256x4xf32, #tpu.memory_space<vmem>>, vector<1x8x4xf32>
    %c0_21 = arith.constant 0 : index
    %c0_22 = arith.constant 0 : index
    %c12 = arith.constant 12 : index
    %10 = vector.load %arg3[%c0_21, %c0_22, %c12] : memref<1x8x128xf32, #tpu.memory_space<vmem>>, vector<1x8x4xf32>
    tpu.vector_store %arg3[%c0_21, %c0_22, %c12], %9 {strides = array<i32>} : memref<1x8x128xf32, #tpu.memory_space<vmem>>, vector<1x8x4xf32>,
    %c0_23 = arith.constant 0 : index
    %c4_24 = arith.constant 4 : index
    %c0_25 = arith.constant 0 : index
    %11 = tpu.strided_load %arg4[%c0_23, %c4_24, %c0_25] {strides = array<i32: 1, 32, 1>} : memref<1x256x4xf32, #tpu.memory_space<vmem>>, vector<1x8x4xf32>
    %c0_26 = arith.constant 0 : index
    %c0_27 = arith.constant 0 : index
    %c16 = arith.constant 16 : index
    %12 = vector.load %arg3[%c0_26, %c0_27, %c16] : memref<1x8x128xf32, #tpu.memory_space<vmem>>, vector<1x8x4xf32>
    tpu.vector_store %arg3[%c0_26, %c0_27, %c16], %11 {strides = array<i32>} : memref<1x8x128xf32, #tpu.memory_space<vmem>>, vector<1x8x4xf32>,
    %c0_28 = arith.constant 0 : index
    %c5 = arith.constant 5 : index
    %c0_29 = arith.constant 0 : index
    %13 = tpu.strided_load %arg4[%c0_28, %c5, %c0_29] {strides = array<i32: 1, 32, 1>} : memref<1x256x4xf32, #tpu.memory_space<vmem>>, vector<1x8x4xf32>
    %c0_30 = arith.constant 0 : index
    %c0_31 = arith.constant 0 : index
    %c20 = arith.constant 20 : index
    %14 = vector.load %arg3[%c0_30, %c0_31, %c20] : memref<1x8x128xf32, #tpu.memory_space<vmem>>, vector<1x8x4xf32>
    tpu.vector_store %arg3[%c0_30, %c0_31, %c20], %13 {strides = array<i32>} : memref<1x8x128xf32, #tpu.memory_space<vmem>>, vector<1x8x4xf32>,
    %c0_32 = arith.constant 0 : index
    %c6 = arith.constant 6 : index
    %c0_33 = arith.constant 0 : index
    %15 = tpu.strided_load %arg4[%c0_32, %c6, %c0_33] {strides = array<i32: 1, 32, 1>} : memref<1x256x4xf32, #tpu.memory_space<vmem>>, vector<1x8x4xf32>
    %c0_34 = arith.constant 0 : index
    %c0_35 = arith.constant 0 : index
    %c24 = arith.constant 24 : index
    %16 = vector.load %arg3[%c0_34, %c0_35, %c24] : memref<1x8x128xf32, #tpu.memory_space<vmem>>, vector<1x8x4xf32>
    tpu.vector_store %arg3[%c0_34, %c0_35, %c24], %15 {strides = array<i32>} : memref<1x8x128xf32, #tpu.memory_space<vmem>>, vector<1x8x4xf32>,
    %c0_36 = arith.constant 0 : index
    %c7 = arith.constant 7 : index
    %c0_37 = arith.constant 0 : index
    %17 = tpu.strided_load %arg4[%c0_36, %c7, %c0_37] {strides = array<i32: 1, 32, 1>} : memref<1x256x4xf32, #tpu.memory_space<vmem>>, vector<1x8x4xf32>
    %c0_38 = arith.constant 0 : index
    %c0_39 = arith.constant 0 : index
    %c28 = arith.constant 28 : index
    %18 = vector.load %arg3[%c0_38, %c0_39, %c28] : memref<1x8x128xf32, #tpu.memory_space<vmem>>, vector<1x8x4xf32>
    tpu.vector_store %arg3[%c0_38, %c0_39, %c28], %17 {strides = array<i32>} : memref<1x8x128xf32, #tpu.memory_space<vmem>>, vector<1x8x4xf32>,
    %c0_40 = arith.constant 0 : index
    %c8_41 = arith.constant 8 : index
    %c0_42 = arith.constant 0 : index
    %19 = tpu.strided_load %arg4[%c0_40, %c8_41, %c0_42] {strides = array<i32: 1, 32, 1>} : memref<1x256x4xf32, #tpu.memory_space<vmem>>, vector<1x8x4xf32>
    %c0_43 = arith.constant 0 : index
    %c0_44 = arith.constant 0 : index
    %c32 = arith.constant 32 : index
    %20 = vector.load %arg3[%c0_43, %c0_44, %c32] : memref<1x8x128xf32, #tpu.memory_space<vmem>>, vector<1x8x4xf32>
    tpu.vector_store %arg3[%c0_43, %c0_44, %c32], %19 {strides = array<i32>} : memref<1x8x128xf32, #tpu.memory_space<vmem>>, vector<1x8x4xf32>,
    %c0_45 = arith.constant 0 : index
    %c9 = arith.constant 9 : index
    %c0_46 = arith.constant 0 : index
    %21 = tpu.strided_load %arg4[%c0_45, %c9, %c0_46] {strides = array<i32: 1, 32, 1>} : memref<1x256x4xf32, #tpu.memory_space<vmem>>, vector<1x8x4xf32>
    %c0_47 = arith.constant 0 : index
    %c0_48 = arith.constant 0 : index
    %c36 = arith.constant 36 : index
    %22 = vector.load %arg3[%c0_47, %c0_48, %c36] : memref<1x8x128xf32, #tpu.memory_space<vmem>>, vector<1x8x4xf32>
    tpu.vector_store %arg3[%c0_47, %c0_48, %c36], %21 {strides = array<i32>} : memref<1x8x128xf32, #tpu.memory_space<vmem>>, vector<1x8x4xf32>,
    %c0_49 = arith.constant 0 : index
    %c10 = arith.constant 10 : index
    %c0_50 = arith.constant 0 : index
    %23 = tpu.strided_load %arg4[%c0_49, %c10, %c0_50] {strides = array<i32: 1, 32, 1>} : memref<1x256x4xf32, #tpu.memory_space<vmem>>, vector<1x8x4xf32>
    %c0_51 = arith.constant 0 : index
    %c0_52 = arith.constant 0 : index
    %c40 = arith.constant 40 : index
    %24 = vector.load %arg3[%c0_51, %c0_52, %c40] : memref<1x8x128xf32, #tpu.memory_space<vmem>>, vector<1x8x4xf32>
    tpu.vector_store %arg3[%c0_51, %c0_52, %c40], %23 {strides = array<i32>} : memref<1x8x128xf32, #tpu.memory_space<vmem>>, vector<1x8x4xf32>,
    %c0_53 = arith.constant 0 : index
    %c11 = arith.constant 11 : index
    %c0_54 = arith.constant 0 : index
    %25 = tpu.strided_load %arg4[%c0_53, %c11, %c0_54] {strides = array<i32: 1, 32, 1>} : memref<1x256x4xf32, #tpu.memory_space<vmem>>, vector<1x8x4xf32>
    %c0_55 = arith.constant 0 : index
    %c0_56 = arith.constant 0 : index
    %c44 = arith.constant 44 : index
    %26 = vector.load %arg3[%c0_55, %c0_56, %c44] : memref<1x8x128xf32, #tpu.memory_space<vmem>>, vector<1x8x4xf32>
    tpu.vector_store %arg3[%c0_55, %c0_56, %c44], %25 {strides = array<i32>} : memref<1x8x128xf32, #tpu.memory_space<vmem>>, vector<1x8x4xf32>,
    %c0_57 = arith.constant 0 : index
    %c12_58 = arith.constant 12 : index
    %c0_59 = arith.constant 0 : index
    %27 = tpu.strided_load %arg4[%c0_57, %c12_58, %c0_59] {strides = array<i32: 1, 32, 1>} : memref<1x256x4xf32, #tpu.memory_space<vmem>>, vector<1x8x4xf32>
    %c0_60 = arith.constant 0 : index
    %c0_61 = arith.constant 0 : index
    %c48 = arith.constant 48 : index
    %28 = vector.load %arg3[%c0_60, %c0_61, %c48] : memref<1x8x128xf32, #tpu.memory_space<vmem>>, vector<1x8x4xf32>
    tpu.vector_store %arg3[%c0_60, %c0_61, %c48], %27 {strides = array<i32>} : memref<1x8x128xf32, #tpu.memory_space<vmem>>, vector<1x8x4xf32>,
    %c0_62 = arith.constant 0 : index
    %c13 = arith.constant 13 : index
    %c0_63 = arith.constant 0 : index
    %29 = tpu.strided_load %arg4[%c0_62, %c13, %c0_63] {strides = array<i32: 1, 32, 1>} : memref<1x256x4xf32, #tpu.memory_space<vmem>>, vector<1x8x4xf32>
    %c0_64 = arith.constant 0 : index
    %c0_65 = arith.constant 0 : index
    %c52 = arith.constant 52 : index
    %30 = vector.load %arg3[%c0_64, %c0_65, %c52] : memref<1x8x128xf32, #tpu.memory_space<vmem>>, vector<1x8x4xf32>
    tpu.vector_store %arg3[%c0_64, %c0_65, %c52], %29 {strides = array<i32>} : memref<1x8x128xf32, #tpu.memory_space<vmem>>, vector<1x8x4xf32>,
    %c0_66 = arith.constant 0 : index
    %c14 = arith.constant 14 : index
    %c0_67 = arith.constant 0 : index
    %31 = tpu.strided_load %arg4[%c0_66, %c14, %c0_67] {strides = array<i32: 1, 32, 1>} : memref<1x256x4xf32, #tpu.memory_space<vmem>>, vector<1x8x4xf32>
    %c0_68 = arith.constant 0 : index
    %c0_69 = arith.constant 0 : index
    %c56 = arith.constant 56 : index
    %32 = vector.load %arg3[%c0_68, %c0_69, %c56] : memref<1x8x128xf32, #tpu.memory_space<vmem>>, vector<1x8x4xf32>
    tpu.vector_store %arg3[%c0_68, %c0_69, %c56], %31 {strides = array<i32>} : memref<1x8x128xf32, #tpu.memory_space<vmem>>, vector<1x8x4xf32>,
    %c0_70 = arith.constant 0 : index
    %c15 = arith.constant 15 : index
    %c0_71 = arith.constant 0 : index
    %33 = tpu.strided_load %arg4[%c0_70, %c15, %c0_71] {strides = array<i32: 1, 32, 1>} : memref<1x256x4xf32, #tpu.memory_space<vmem>>, vector<1x8x4xf32>
    %c0_72 = arith.constant 0 : index
    %c0_73 = arith.constant 0 : index
    %c60 = arith.constant 60 : index
    %34 = vector.load %arg3[%c0_72, %c0_73, %c60] : memref<1x8x128xf32, #tpu.memory_space<vmem>>, vector<1x8x4xf32>
    tpu.vector_store %arg3[%c0_72, %c0_73, %c60], %33 {strides = array<i32>} : memref<1x8x128xf32, #tpu.memory_space<vmem>>, vector<1x8x4xf32>,
    %c0_74 = arith.constant 0 : index
    %c16_75 = arith.constant 16 : index
    %c0_76 = arith.constant 0 : index
    %35 = tpu.strided_load %arg4[%c0_74, %c16_75, %c0_76] {strides = array<i32: 1, 32, 1>} : memref<1x256x4xf32, #tpu.memory_space<vmem>>, vector<1x8x4xf32>
    %c0_77 = arith.constant 0 : index
    %c0_78 = arith.constant 0 : index
    %c64 = arith.constant 64 : index
    %36 = vector.load %arg3[%c0_77, %c0_78, %c64] : memref<1x8x128xf32, #tpu.memory_space<vmem>>, vector<1x8x4xf32>
    tpu.vector_store %arg3[%c0_77, %c0_78, %c64], %35 {strides = array<i32>} : memref<1x8x128xf32, #tpu.memory_space<vmem>>, vector<1x8x4xf32>,
    %c0_79 = arith.constant 0 : index
    %c17 = arith.constant 17 : index
    %c0_80 = arith.constant 0 : index
    %37 = tpu.strided_load %arg4[%c0_79, %c17, %c0_80] {strides = array<i32: 1, 32, 1>} : memref<1x256x4xf32, #tpu.memory_space<vmem>>, vector<1x8x4xf32>
    %c0_81 = arith.constant 0 : index
    %c0_82 = arith.constant 0 : index
    %c68 = arith.constant 68 : index
    %38 = vector.load %arg3[%c0_81, %c0_82, %c68] : memref<1x8x128xf32, #tpu.memory_space<vmem>>, vector<1x8x4xf32>
    tpu.vector_store %arg3[%c0_81, %c0_82, %c68], %37 {strides = array<i32>} : memref<1x8x128xf32, #tpu.memory_space<vmem>>, vector<1x8x4xf32>,
    %c0_83 = arith.constant 0 : index
    %c18 = arith.constant 18 : index
    %c0_84 = arith.constant 0 : index
    %39 = tpu.strided_load %arg4[%c0_83, %c18, %c0_84] {strides = array<i32: 1, 32, 1>} : memref<1x256x4xf32, #tpu.memory_space<vmem>>, vector<1x8x4xf32>
    %c0_85 = arith.constant 0 : index
    %c0_86 = arith.constant 0 : index
    %c72 = arith.constant 72 : index
    %40 = vector.load %arg3[%c0_85, %c0_86, %c72] : memref<1x8x128xf32, #tpu.memory_space<vmem>>, vector<1x8x4xf32>
    tpu.vector_store %arg3[%c0_85, %c0_86, %c72], %39 {strides = array<i32>} : memref<1x8x128xf32, #tpu.memory_space<vmem>>, vector<1x8x4xf32>,
    %c0_87 = arith.constant 0 : index
    %c19 = arith.constant 19 : index
    %c0_88 = arith.constant 0 : index
    %41 = tpu.strided_load %arg4[%c0_87, %c19, %c0_88] {strides = array<i32: 1, 32, 1>} : memref<1x256x4xf32, #tpu.memory_space<vmem>>, vector<1x8x4xf32>
    %c0_89 = arith.constant 0 : index
    %c0_90 = arith.constant 0 : index
    %c76 = arith.constant 76 : index
    %42 = vector.load %arg3[%c0_89, %c0_90, %c76] : memref<1x8x128xf32, #tpu.memory_space<vmem>>, vector<1x8x4xf32>
    tpu.vector_store %arg3[%c0_89, %c0_90, %c76], %41 {strides = array<i32>} : memref<1x8x128xf32, #tpu.memory_space<vmem>>, vector<1x8x4xf32>,
    %c0_91 = arith.constant 0 : index
    %c20_92 = arith.constant 20 : index
    %c0_93 = arith.constant 0 : index
    %43 = tpu.strided_load %arg4[%c0_91, %c20_92, %c0_93] {strides = array<i32: 1, 32, 1>} : memref<1x256x4xf32, #tpu.memory_space<vmem>>, vector<1x8x4xf32>
    %c0_94 = arith.constant 0 : index
    %c0_95 = arith.constant 0 : index
    %c80 = arith.constant 80 : index
    %44 = vector.load %arg3[%c0_94, %c0_95, %c80] : memref<1x8x128xf32, #tpu.memory_space<vmem>>, vector<1x8x4xf32>
    tpu.vector_store %arg3[%c0_94, %c0_95, %c80], %43 {strides = array<i32>} : memref<1x8x128xf32, #tpu.memory_space<vmem>>, vector<1x8x4xf32>,
    %c0_96 = arith.constant 0 : index
    %c21 = arith.constant 21 : index
    %c0_97 = arith.constant 0 : index
    %45 = tpu.strided_load %arg4[%c0_96, %c21, %c0_97] {strides = array<i32: 1, 32, 1>} : memref<1x256x4xf32, #tpu.memory_space<vmem>>, vector<1x8x4xf32>
    %c0_98 = arith.constant 0 : index
    %c0_99 = arith.constant 0 : index
    %c84 = arith.constant 84 : index
    %46 = vector.load %arg3[%c0_98, %c0_99, %c84] : memref<1x8x128xf32, #tpu.memory_space<vmem>>, vector<1x8x4xf32>
    tpu.vector_store %arg3[%c0_98, %c0_99, %c84], %45 {strides = array<i32>} : memref<1x8x128xf32, #tpu.memory_space<vmem>>, vector<1x8x4xf32>,
    %c0_100 = arith.constant 0 : index
    %c22 = arith.constant 22 : index
    %c0_101 = arith.constant 0 : index
    %47 = tpu.strided_load %arg4[%c0_100, %c22, %c0_101] {strides = array<i32: 1, 32, 1>} : memref<1x256x4xf32, #tpu.memory_space<vmem>>, vector<1x8x4xf32>
    %c0_102 = arith.constant 0 : index
    %c0_103 = arith.constant 0 : index
    %c88 = arith.constant 88 : index
    %48 = vector.load %arg3[%c0_102, %c0_103, %c88] : memref<1x8x128xf32, #tpu.memory_space<vmem>>, vector<1x8x4xf32>
    tpu.vector_store %arg3[%c0_102, %c0_103, %c88], %47 {strides = array<i32>} : memref<1x8x128xf32, #tpu.memory_space<vmem>>, vector<1x8x4xf32>,
    %c0_104 = arith.constant 0 : index
    %c23 = arith.constant 23 : index
    %c0_105 = arith.constant 0 : index
    %49 = tpu.strided_load %arg4[%c0_104, %c23, %c0_105] {strides = array<i32: 1, 32, 1>} : memref<1x256x4xf32, #tpu.memory_space<vmem>>, vector<1x8x4xf32>
    %c0_106 = arith.constant 0 : index
    %c0_107 = arith.constant 0 : index
    %c92 = arith.constant 92 : index
    %50 = vector.load %arg3[%c0_106, %c0_107, %c92] : memref<1x8x128xf32, #tpu.memory_space<vmem>>, vector<1x8x4xf32>
    tpu.vector_store %arg3[%c0_106, %c0_107, %c92], %49 {strides = array<i32>} : memref<1x8x128xf32, #tpu.memory_space<vmem>>, vector<1x8x4xf32>,
    %c0_108 = arith.constant 0 : index
    %c24_109 = arith.constant 24 : index
    %c0_110 = arith.constant 0 : index
    %51 = tpu.strided_load %arg4[%c0_108, %c24_109, %c0_110] {strides = array<i32: 1, 32, 1>} : memref<1x256x4xf32, #tpu.memory_space<vmem>>, vector<1x8x4xf32>
    %c0_111 = arith.constant 0 : index
    %c0_112 = arith.constant 0 : index
    %c96 = arith.constant 96 : index
    %52 = vector.load %arg3[%c0_111, %c0_112, %c96] : memref<1x8x128xf32, #tpu.memory_space<vmem>>, vector<1x8x4xf32>
    tpu.vector_store %arg3[%c0_111, %c0_112, %c96], %51 {strides = array<i32>} : memref<1x8x128xf32, #tpu.memory_space<vmem>>, vector<1x8x4xf32>,
    %c0_113 = arith.constant 0 : index
    %c25 = arith.constant 25 : index
    %c0_114 = arith.constant 0 : index
    %53 = tpu.strided_load %arg4[%c0_113, %c25, %c0_114] {strides = array<i32: 1, 32, 1>} : memref<1x256x4xf32, #tpu.memory_space<vmem>>, vector<1x8x4xf32>
    %c0_115 = arith.constant 0 : index
    %c0_116 = arith.constant 0 : index
    %c100 = arith.constant 100 : index
    %54 = vector.load %arg3[%c0_115, %c0_116, %c100] : memref<1x8x128xf32, #tpu.memory_space<vmem>>, vector<1x8x4xf32>
    tpu.vector_store %arg3[%c0_115, %c0_116, %c100], %53 {strides = array<i32>} : memref<1x8x128xf32, #tpu.memory_space<vmem>>, vector<1x8x4xf32>,
    %c0_117 = arith.constant 0 : index
    %c26 = arith.constant 26 : index
    %c0_118 = arith.constant 0 : index
    %55 = tpu.strided_load %arg4[%c0_117, %c26, %c0_118] {strides = array<i32: 1, 32, 1>} : memref<1x256x4xf32, #tpu.memory_space<vmem>>, vector<1x8x4xf32>
    %c0_119 = arith.constant 0 : index
    %c0_120 = arith.constant 0 : index
    %c104 = arith.constant 104 : index
    %56 = vector.load %arg3[%c0_119, %c0_120, %c104] : memref<1x8x128xf32, #tpu.memory_space<vmem>>, vector<1x8x4xf32>
    tpu.vector_store %arg3[%c0_119, %c0_120, %c104], %55 {strides = array<i32>} : memref<1x8x128xf32, #tpu.memory_space<vmem>>, vector<1x8x4xf32>,
    %c0_121 = arith.constant 0 : index
    %c27 = arith.constant 27 : index
    %c0_122 = arith.constant 0 : index
    %57 = tpu.strided_load %arg4[%c0_121, %c27, %c0_122] {strides = array<i32: 1, 32, 1>} : memref<1x256x4xf32, #tpu.memory_space<vmem>>, vector<1x8x4xf32>
    %c0_123 = arith.constant 0 : index
    %c0_124 = arith.constant 0 : index
    %c108 = arith.constant 108 : index
    %58 = vector.load %arg3[%c0_123, %c0_124, %c108] : memref<1x8x128xf32, #tpu.memory_space<vmem>>, vector<1x8x4xf32>
    tpu.vector_store %arg3[%c0_123, %c0_124, %c108], %57 {strides = array<i32>} : memref<1x8x128xf32, #tpu.memory_space<vmem>>, vector<1x8x4xf32>,
    %c0_125 = arith.constant 0 : index
    %c28_126 = arith.constant 28 : index
    %c0_127 = arith.constant 0 : index
    %59 = tpu.strided_load %arg4[%c0_125, %c28_126, %c0_127] {strides = array<i32: 1, 32, 1>} : memref<1x256x4xf32, #tpu.memory_space<vmem>>, vector<1x8x4xf32>
    %c0_128 = arith.constant 0 : index
    %c0_129 = arith.constant 0 : index
    %c112 = arith.constant 112 : index
    %60 = vector.load %arg3[%c0_128, %c0_129, %c112] : memref<1x8x128xf32, #tpu.memory_space<vmem>>, vector<1x8x4xf32>
    tpu.vector_store %arg3[%c0_128, %c0_129, %c112], %59 {strides = array<i32>} : memref<1x8x128xf32, #tpu.memory_space<vmem>>, vector<1x8x4xf32>,
    %c0_130 = arith.constant 0 : index
    %c29 = arith.constant 29 : index
    %c0_131 = arith.constant 0 : index
    %61 = tpu.strided_load %arg4[%c0_130, %c29, %c0_131] {strides = array<i32: 1, 32, 1>} : memref<1x256x4xf32, #tpu.memory_space<vmem>>, vector<1x8x4xf32>
    %c0_132 = arith.constant 0 : index
    %c0_133 = arith.constant 0 : index
    %c116 = arith.constant 116 : index
    %62 = vector.load %arg3[%c0_132, %c0_133, %c116] : memref<1x8x128xf32, #tpu.memory_space<vmem>>, vector<1x8x4xf32>
    tpu.vector_store %arg3[%c0_132, %c0_133, %c116], %61 {strides = array<i32>} : memref<1x8x128xf32, #tpu.memory_space<vmem>>, vector<1x8x4xf32>,
    %c0_134 = arith.constant 0 : index
    %c30 = arith.constant 30 : index
    %c0_135 = arith.constant 0 : index
    %63 = tpu.strided_load %arg4[%c0_134, %c30, %c0_135] {strides = array<i32: 1, 32, 1>} : memref<1x256x4xf32, #tpu.memory_space<vmem>>, vector<1x8x4xf32>
    %c0_136 = arith.constant 0 : index
    %c0_137 = arith.constant 0 : index
    %c120 = arith.constant 120 : index
    %64 = vector.load %arg3[%c0_136, %c0_137, %c120] : memref<1x8x128xf32, #tpu.memory_space<vmem>>, vector<1x8x4xf32>
    tpu.vector_store %arg3[%c0_136, %c0_137, %c120], %63 {strides = array<i32>} : memref<1x8x128xf32, #tpu.memory_space<vmem>>, vector<1x8x4xf32>,
    %c0_138 = arith.constant 0 : index
    %c31 = arith.constant 31 : index
    %c0_139 = arith.constant 0 : index
    %65 = tpu.strided_load %arg4[%c0_138, %c31, %c0_139] {strides = array<i32: 1, 32, 1>} : memref<1x256x4xf32, #tpu.memory_space<vmem>>, vector<1x8x4xf32>
    %c0_140 = arith.constant 0 : index
    %c0_141 = arith.constant 0 : index
    %c124 = arith.constant 124 : index
    %66 = vector.load %arg3[%c0_140, %c0_141, %c124] : memref<1x8x128xf32, #tpu.memory_space<vmem>>, vector<1x8x4xf32>
    tpu.vector_store %arg3[%c0_140, %c0_141, %c124], %65 {strides = array<i32>} : memref<1x8x128xf32, #tpu.memory_space<vmem>>, vector<1x8x4xf32>,
    return
  }
  func.func @transform_0(%arg0: i32, %arg1: i32) -> (i32, i32, i32) {
    %c0_i32 = arith.constant 0 : i32
    %c0_i32_0 = arith.constant 0 : i32
    return %arg0, %c0_i32, %arg1 : i32, i32, i32
  }
  func.func @transform_1(%arg0: i32, %arg1: i32) -> (i32, i32, i32) {
    %c0_i32 = arith.constant 0 : i32
    %c0_i32_0 = arith.constant 0 : i32
    return %arg0, %arg1, %c0_i32 : i32, i32, i32
  }
}

</mosaic_0001>

<bundles_post_ra>
// kernel: tpu_custom_call.1
= control target key start
LH: loop header
LB: loop body
LE: loop exit
PB: predicated region body
PF: predicated region fallthrough
CT: control target
= control target key end

     0   :  { %6 = vsyncpa [#allocation4], 0  ;;  %s1559_s0 = inlined_call_operand.hbm [shape: f32[2,4,256], index: 0, kind: input, shape index: {}]   ;;  %s1560_s1 = inlined_call_operand.hbm [shape: f32[2,8,128], index: 1, kind: output, shape index: {}]  }
   0x1   :  { %8 = vsyncpa [#allocation4 + $0x1], 0 }
   0x2   :  { %9 = vsyncpa [#allocation5], 0 }
   0x3   :  { %11 = vsyncpa [#allocation5 + $0x1], 0  ;;  %s1315_s6 = smov 0   ;;  %s1317_s7 = smov 0  }
   0x4   :  { %s1319_s8 = smov 0   ;;  %s1321_s9 = smov 0  }
   0x5   :  { %s1323_s10 = smov 0   ;;  %s1325_s11 = smov 0  }
   0x6 LB: > { %s1048_s12 = sadd.s32 4294967295, %s1270_s11   ;;  %s1049_s13 = sadd.s32 4294967294, %s1270_s11   ;;  %s1270_s11 = sphi %s1325_s11, %s17_s11   ;;  %s1266_s10 = sphi %s1323_s10, %s1576_s10   ;;  %s1262_s9 = sphi %s1321_s9, %s1575_s9   ;;  %s1258_s8 = sphi %s1319_s8, %s1574_s8   ;;  %s1254_s7 = sphi %s1317_s7, %s1573_s7   ;;  %s1250_s6 = sphi %s1315_s6, %s1572_s6  }
   0x7   : > { %s29_s14 = sadd.s32 1, %s1266_s10  ;;  %s38_s15 = sadd.s32 1, %s1258_s8 }
   0x8   : > { %p31_p0 = scmp.ge.s32.totalorder %s29_s14, 2  ;;  %p45_p1 = scmp.ne.s32.totalorder %s1258_s8, %s1254_s7 }
   0x9   : > { %p46_p2 = scmp.eq.s32.totalorder %s1270_s11, 0  ;;  %p51_p3 = scmp.ne.s32.totalorder %s1254_s7, %s1250_s6 }
   0xa   : > { %s1578_s14 = smov (%p31_p0, %s29_s14), 0  ;;  %p52_p5 = scmp.eq.s32.totalorder %s1048_s12, 0 }
   0xb   : > { %p1356_p4 = por %p46_p2, %p45_p1  ;;  %s33_s17 = ssub.s32 %s1266_s10, %s1578_s14 }
   0xc   : > { %p77_p6 = scmp.eq.s32.totalorder %s1048_s12, 1  ;;  %p36_p7 = scmp.eq.s32.totalorder %s33_s17, 0 }
   0xd   : > { %p1362_p8 = por %p52_p5, %p51_p3  ;;  %p83_p10 = scmp.eq.s32.totalorder %s1049_s13, 1 }
   0xe   : > { %p1366_p9 = por %p77_p6, %p45_p1  ;;  %p1075_p13 = scmp.lt.s32.totalorder %s1270_s11, 2 }
   0xf   : > { %s1371_s20 = scalar_select %p36_p7, %s1258_s8, %s38_s15  }
  0x10   : > { %s1564_s19 = scalar_select %p1366_p9, 1, 0 }
  0x11   : > { %p1373_p11 = por %p83_p10, %p51_p3  ;;  %s103_s22 = sand.u32 1, %s1258_s8  }
  0x12   : > { %s1052_s23 = sshll.u32 %s103_s22, 3  ;;  %s1062_s24 = sshll.u32 %s1266_s10, 7 }
  0x13   : > { %s1565_s21 = scalar_select %p1373_p11, 1, 0 }
  0x14   : > { %s1384_s27 = scalar_lea.hbm %s1559_s0, %s1062_s24  ;;  %s107_s28 = scalar_lea.vmem [#allocation3], %s1052_s23 }
  0x15   : > { %s117_s29 = sshll.u32 %s107_s28, 4  ;;  %p1390_p0 = pnand %p1075_p13, %p1356_p4  ;;  %s1386_s29 = int_to_ptr.vmem [resolvable:$true] %s117_s29 }
  0x16   : > { %s104_s2 = scalar_lea.sflag [#allocation4], %s103_s22  ;;  %s1158_s3 = scalar_lea.hbm %s1384_s27, 128 }
  0x17   : > { %p1159_p3 = scmp.ne.s32.totalorder %s1384_s27, %s1158_s3  ;;  %p1160_p5 = pneg %p1390_p0 }
  0x18   : > { %s1163_s12 = scalar_lea.hbm %s1559_s0, 256  ;;  %p1164_p4 = scmp.lt.u32.totalorder %s1384_s27, %s1559_s0 }
  0x19   : > { %p1161_p6 = pnand %p1160_p5, %p1159_p3  ;;  %p1165_p10 = scmp.lt.u32.totalorder %s1163_s12, %s1158_s3 }
  0x1a   : > { %p1167_p12 = scmp.lt.u32.totalorder %s1158_s3, %s1384_s27 }
  0x1b   : > { %p1162_p7 = pneg %p1161_p6  ;;  %p1166_p13 = por %p1165_p10, %p1164_p4 }
  0x1d   : > { %p1168_p1 = por %p1167_p12, %p1166_p13 }
  0x1f   : > { %p1169_p2 = pnand %p1168_p1, %p1162_p7 }
  0x21   : > { %1172 = shalt.err (!%p1169_p2)
}
  0x22   : > { %s1173_s16 = scalar_lea.vmem %s1386_s29, 128  ;;  %s1272_s17 = smov [#allocation3]  }
  0x23   : > { %p1174_p3 = scmp.ne.s32.totalorder %s1386_s29, %s1173_s16  ;;  %s1178_s22 = sshll.u32 %s1272_s17, 4  ;;  %s1179_s22 = int_to_ptr.vmem [resolvable:$false] %s1178_s22 }
  0x24   : > { %s1180_s23 = scalar_lea.vmem %s1179_s22, 256  ;;  %p1181_p9 = scmp.lt.s32.totalorder %s1386_s29, %s1179_s22 }
  0x25   : > { %p1176_p6 = pnand %p1174_p3, %p1160_p5  ;;  %p1182_p4 = scmp.lt.s32.totalorder %s1180_s23, %s1173_s16 }
  0x27   : > { %p1177_p11 = pneg %p1176_p6  ;;  %p1183_p10 = por %p1182_p4, %p1181_p9 }
  0x29   : > { %p1184_p12 = pnand %p1183_p10, %p1177_p11 }
  0x2b   : > { %1187 = shalt.err (!%p1184_p12)
}
  0x2c   : > { %1070 = dma.hbm_to_vmem [thread:$0]  (!%p1390_p0), %s1384_s27, 128, %s1386_s29, %s104_s2  }
  0x2d   : > { %p1567_p1 = scmp.lt.s32.totalorder %s1270_s11, 3  ;;  %p1568_p2 = scmp.ge.s32.totalorder %s1270_s11, 1 }
  0x2f   : > { %p123_p5 = pnand %p1568_p2, %p1567_p1 }
  0x30   : > { %s1426_s24 = sand.u32 (!%p123_p5), 1, %s1254_s7  }
  0x31   : > { %126 = sbr.rel (%p123_p5) target bundleno = 554 (0x22a), region = 24  ;;  %s1056_s25 = sshll.u32 (!%p123_p5), %s1426_s24, 3 }
  0x32   : > { %s129_s26 = scalar_lea.sflag (!%p123_p5), [#allocation4], %s1426_s24  ;;  %s132_s28 = scalar_lea.vmem (!%p123_p5), [#allocation3], %s1056_s25 }
  0x38   : > { %1241 = dma.done.wait (%p1362_p8), %s129_s26, 128  }
  0x39   : > { %1243 = vsyncadd (%p1362_p8), %s129_s26, 4294967168  ;;  %v152_v0 = vld [vmem:[%s132_s28] sm:$0xff]  ;;  %vm220_vm0 = vcmask 31744   ;;  %s1273_s18 = smov 4   ;;  %s1274_s27 = smov 8   ;;  %vm289_vm1 = vcmask 64544  }
  0x3a   : > { %156 = vxpose.xlu0.b32.start.end [1/1] (short) %v152_v0, 128  ;;  %v154_v1 = vcombine.high %v152_v0, %v152_v0  ;;  %s1275_s29 = smov 12   ;;  %s1276_s30 = smov 72   ;;  %vm311_vm2 = vcmask 97344   ;;  %vm333_vm3 = vcmask 130144   ;;  %vm355_vm4 = vcmask 162944  }
  0x3b   : > { %s1277_s2 = smov 16   ;;  %s1278_s3 = smov 20   ;;  %vm377_vm5 = vcmask 195744   ;;  %vm399_vm6 = vcmask 228544   ;;  %vm421_vm7 = vcmask 261344   ;;  %vm443_vm8 = vcmask 294144  }
  0x3c   : > { %s1279_s4 = smov 24   ;;  %s1280_s5 = smov 28   ;;  %vm465_vm9 = vcmask 326944   ;;  %vm487_vm10 = vcmask 359744   ;;  %vm509_vm11 = vcmask 392544   ;;  %vm531_vm12 = vcmask 425344  }
  0x3d   : > { %s1470_s12 = scalar_lea.vmem [#allocation6], %s1056_s25  ;;  %s1281_s13 = smov 32   ;;  %vm553_vm13 = vcmask 458144   ;;  %vm575_vm14 = vcmask 490944   ;;  %vm597_vm15 = vcmask 523744  }
  0x3e   : > { %s1282_s15 = smov 36   ;;  %s1283_s16 = smov 40  }
  0x3f   : > { %s1284_s17 = smov 44   ;;  %s1285_s22 = smov 48  }
  0x40   : > { %s1286_s23 = smov 52   ;;  %s1287_s25 = smov 56  }
  0x41   : > { %s1288_s26 = smov 60   ;;  %s1289_s28 = smov 64  }
  0x42   : > { %p1569_p9 = scmp.ne.s32.totalorder %s1564_s19, 0 }
  0x77   : > { %188 = vxpose.xlu0.b32.start.end [1/1] (short) %v154_v1, 128 }
  0xba   : > { %v172_v2 = vpop.trf.xlu0 }
  0xbb   : > { %221 = vst.msk [vmem:[#allocation2] sm:$0xff] %vm220_vm0, %v172_v2 }
  0xbe   : > { %v173_v3 = vpop.trf.xlu0 }
  0xbf   : > { %222 = vst.msk [vmem:[#allocation2 + $0x8] sm:$0xff] %vm220_vm0, %v173_v3 }
  0xc2   : > { %v174_v4 = vpop.trf.xlu0  ;;  %v270_v31 = vld [vmem:[#allocation2 + $0x1] ss:$32 sm:$0x1]  ;;  %v292_v37 = vld [vmem:[#allocation2 + $0x2] ss:$32 sm:$0x1] }
  0xc3   : > { %223 = vst.msk [vmem:[#allocation2 + $0x10] sm:$0xff] %vm220_vm0, %v174_v4  ;;  %v314_v47 = vld [vmem:[#allocation2 + $0x3] ss:$32 sm:$0x1] }
  0xc4   : > { %v336_v61 = vld [vmem:[#allocation2 + $0x4] ss:$32 sm:$0x1] }
  0xc6   : > { %v175_v5 = vpop.trf.xlu0 }
  0xc7   : > { %224 = vst.msk [vmem:[#allocation2 + $0x18] sm:$0xff] %vm220_vm0, %v175_v5 }
  0xca   : > { %v176_v6 = vpop.trf.xlu0  ;;  %v644_v48 = vld [vmem:[#allocation2 + $0x12] ss:$32 sm:$0x1] }
  0xcb   : > { %225 = vst.msk [vmem:[#allocation2 + $0x20] sm:$0xff] %vm220_vm0, %v176_v6 }
  0xce   : > { %v177_v7 = vpop.trf.xlu0 }
  0xcf   : > { %226 = vst.msk [vmem:[#allocation2 + $0x28] sm:$0xff] %vm220_vm0, %v177_v7 }
  0xd2   : > { %v178_v8 = vpop.trf.xlu0  ;;  %v271_v29 = vld [vmem:[#allocation2 + $0x1] ss:$32 sm:$0x2]  ;;  %v293_v35 = vld [vmem:[#allocation2 + $0x2] ss:$32 sm:$0x2] }
  0xd3   : > { %227 = vst.msk [vmem:[#allocation2 + $0x30] sm:$0xff] %vm220_vm0, %v178_v8  ;;  %v272_v33 = vor.u32 %v271_v29, %v270_v31  ;;  %v294_v42 = vor.u32 %v293_v35, %v292_v37  ;;  %v315_v43 = vld [vmem:[#allocation2 + $0x3] ss:$32 sm:$0x2] }
  0xd4   : > { %v316_v58 = vor.u32 %v315_v43, %v314_v47  ;;  %v337_v62 = vld [vmem:[#allocation2 + $0x4] ss:$32 sm:$0x2]  ;;  %v359_v8 = vld [vmem:[#allocation2 + $0x5] ss:$32 sm:$0x2] }
  0xd5   : > { %v380_v37 = vld [vmem:[#allocation2 + $0x6] ss:$32 sm:$0x1] }
  0xd6   : > { %v179_v9 = vpop.trf.xlu0 }
  0xd7   : > { %228 = vst.msk [vmem:[#allocation2 + $0x38] sm:$0xff] %vm220_vm0, %v179_v9 }
  0xda   : > { %v180_v10 = vpop.trf.xlu0  ;;  %v645_v44 = vld [vmem:[#allocation2 + $0x12] ss:$32 sm:$0x2] }
  0xdb   : > { %229 = vst.msk [vmem:[#allocation2 + $0x40] sm:$0xff] %vm220_vm0, %v180_v10  ;;  %v646_v60 = vor.u32 %v645_v44, %v644_v48 }
  0xde   : > { %v181_v11 = vpop.trf.xlu0 }
  0xdf   : > { %230 = vst.msk [vmem:[#allocation2 + $0x48] sm:$0xff] %vm220_vm0, %v181_v11 }
  0xe2   : > { %v182_v12 = vpop.trf.xlu0  ;;  %v273_v32 = vld [vmem:[#allocation2 + $0x1] ss:$32 sm:$0x4]  ;;  %v295_v40 = vld [vmem:[#allocation2 + $0x2] ss:$32 sm:$0x4] }
  0xe3   : > { %231 = vst.msk [vmem:[#allocation2 + $0x50] sm:$0xff] %vm220_vm0, %v182_v12  ;;  %v274_v36 = vor.u32 %v273_v32, %v272_v33  ;;  %v296_v50 = vor.u32 %v295_v40, %v294_v42  ;;  %v317_v51 = vld [vmem:[#allocation2 + $0x3] ss:$32 sm:$0x4]  ;;  %v338_v12 = vor.u32 %v337_v62, %v336_v61 }
  0xe4   : > { %v339_v1 = vld [vmem:[#allocation2 + $0x4] ss:$32 sm:$0x4]  ;;  %v318_v4 = vor.u32 %v317_v51, %v316_v58 }
  0xe6   : > { %v183_v13 = vpop.trf.xlu0 }
  0xe7   : > { %232 = vst.msk [vmem:[#allocation2 + $0x58] sm:$0xff] %vm220_vm0, %v183_v13 }
  0xea   : > { %v184_v14 = vpop.trf.xlu0  ;;  %v647_v52 = vld [vmem:[#allocation2 + $0x12] ss:$32 sm:$0x4] }
  0xeb   : > { %233 = vst.msk [vmem:[#allocation2 + $0x60] sm:$0xff] %vm220_vm0, %v184_v14  ;;  %v648_v6 = vor.u32 %v647_v52, %v646_v60 }
  0xee   : > { %v185_v15 = vpop.trf.xlu0 }
  0xef   : > { %234 = vst.msk [vmem:[#allocation2 + $0x68] sm:$0xff] %vm220_vm0, %v185_v15 }
  0xf2   : > { %v186_v16 = vpop.trf.xlu0  ;;  %v275_v34 = vld [vmem:[#allocation2 + $0x1] ss:$32 sm:$0x8]  ;;  %v297_v46 = vld [vmem:[#allocation2 + $0x2] ss:$32 sm:$0x8] }
  0xf3   : > { %235 = vst.msk [vmem:[#allocation2 + $0x70] sm:$0xff] %vm220_vm0, %v186_v16  ;;  %v276_v41 = vor.u32 %v275_v34, %v274_v36  ;;  %v298_v57 = vor.u32 %v297_v46, %v296_v50  ;;  %v319_v59 = vld [vmem:[#allocation2 + $0x3] ss:$32 sm:$0x8] }
  0xf4   : > { %v320_v15 = vor.u32 %v319_v59, %v318_v4  ;;  %v363_v36 = vld [vmem:[#allocation2 + $0x5] ss:$32 sm:$0x8]  ;;  %v383_v46 = vld [vmem:[#allocation2 + $0x6] ss:$32 sm:$0x4] }
  0xf5   : > { %v402_v59 = vld [vmem:[#allocation2 + $0x7] ss:$32 sm:$0x1]  ;;  %v256_v4 = vld [vmem:[#allocation2] ss:$32 sm:$0x4] }
  0xf6   : > { %v187_v17 = vpop.trf.xlu0 }
  0xf7   : > { %236 = vst.msk [vmem:[#allocation2 + $0x78] sm:$0xff] %vm220_vm0, %v187_v17 }
  0xfa   : > { %v204_v18 = vpop.trf.xlu0  ;;  %v649_v0 = vld [vmem:[#allocation2 + $0x12] ss:$32 sm:$0x8] }
  0xfb   : > { %237 = vst.msk [vmem:[#allocation2 + $0x80] sm:$0xff] %vm220_vm0, %v204_v18  ;;  %v650_v17 = vor.u32 %v649_v0, %v648_v6  ;;  %v341_v18 = vld [vmem:[#allocation2 + $0x4] ss:$32 sm:$0x8] }
  0xfc   : > { %v425_v0 = vld [vmem:[#allocation2 + $0x8] ss:$32 sm:$0x2] }
  0xfe   : > { %v205_v19 = vpop.trf.xlu0 }
  0xff   : > { %238 = vst.msk [vmem:[#allocation2 + $0x88] sm:$0xff] %vm220_vm0, %v205_v19  ;;  %v358_v19 = vld [vmem:[#allocation2 + $0x5] ss:$32 sm:$0x1] }
 0x100   : > { %v360_v31 = vor.u32 %v359_v8, %v358_v19 }
 0x102   : > { %v206_v20 = vpop.trf.xlu0  ;;  %v277_v39 = vld [vmem:[#allocation2 + $0x1] ss:$32 sm:$0x10]  ;;  %v299_v55 = vld [vmem:[#allocation2 + $0x2] ss:$32 sm:$0x10] }
 0x103   : > { %239 = vst.msk [vmem:[#allocation2 + $0x90] sm:$0xff] %vm220_vm0, %v206_v20  ;;  %v278_v49 = vor.u32 %v277_v39, %v276_v41  ;;  %v300_v3 = vor.u32 %v299_v55, %v298_v57  ;;  %v321_v5 = vld [vmem:[#allocation2 + $0x3] ss:$32 sm:$0x10] }
 0x104   : > { %v403_v55 = vld [vmem:[#allocation2 + $0x7] ss:$32 sm:$0x2] }
 0x105   : > { %v404_v8 = vor.u32 %v403_v55, %v402_v59  ;;  %v471_v55 = vld [vmem:[#allocation2 + $0xa] ss:$32 sm:$0x4]  ;;  %v491_v59 = vld [vmem:[#allocation2 + $0xb] ss:$32 sm:$0x2] }
 0x106   : > { %v207_v21 = vpop.trf.xlu0 }
 0x107   : > { %240 = vst.msk [vmem:[#allocation2 + $0x98] sm:$0xff] %vm220_vm0, %v207_v21 }
 0x10a   : > { %v208_v22 = vpop.trf.xlu0  ;;  %v651_v7 = vld [vmem:[#allocation2 + $0x12] ss:$32 sm:$0x10] }
 0x10b   : > { %241 = vst.msk [vmem:[#allocation2 + $0xa0] sm:$0xff] %vm220_vm0, %v208_v22 }
 0x10e   : > { %v209_v23 = vpop.trf.xlu0 }
 0x10f   : > { %242 = vst.msk [vmem:[#allocation2 + $0xa8] sm:$0xff] %vm220_vm0, %v209_v23  ;;  %v322_v23 = vor.u32 %v321_v5, %v320_v15 }
 0x112   : > { %v210_v24 = vpop.trf.xlu0  ;;  %v279_v45 = vld [vmem:[#allocation2 + $0x1] ss:$32 sm:$0x20]  ;;  %v301_v63 = vld [vmem:[#allocation2 + $0x2] ss:$32 sm:$0x20] }
 0x113   : > { %243 = vst.msk [vmem:[#allocation2 + $0xb0] sm:$0xff] %vm220_vm0, %v210_v24  ;;  %v280_v56 = vor.u32 %v279_v45, %v278_v49  ;;  %v302_v14 = vor.u32 %v301_v63, %v300_v3  ;;  %v323_v16 = vld [vmem:[#allocation2 + $0x3] ss:$32 sm:$0x20]  ;;  %v652_v24 = vor.u32 %v651_v7, %v650_v17 }
 0x114   : > { %v324_v33 = vor.u32 %v323_v16, %v322_v23  ;;  %v345_v40 = vld [vmem:[#allocation2 + $0x4] ss:$32 sm:$0x20]  ;;  %v365_v45 = vld [vmem:[#allocation2 + $0x5] ss:$32 sm:$0x10] }
 0x115   : > { %v367_v58 = vld [vmem:[#allocation2 + $0x5] ss:$32 sm:$0x20]  ;;  %v405_v63 = vld [vmem:[#allocation2 + $0x7] ss:$32 sm:$0x4] }
 0x116   : > { %v211_v25 = vpop.trf.xlu0  ;;  %v387_v3 = vld [vmem:[#allocation2 + $0x6] ss:$32 sm:$0x10]  ;;  %v406_v17 = vor.u32 %v405_v63, %v404_v8  ;;  %v493_v8 = vld [vmem:[#allocation2 + $0xb] ss:$32 sm:$0x4] }
 0x117   : > { %244 = vst.msk [vmem:[#allocation2 + $0xb8] sm:$0xff] %vm220_vm0, %v211_v25  ;;  %v340_v25 = vor.u32 %v339_v1, %v338_v12  ;;  %v253_v1 = vld [vmem:[#allocation2] ss:$32 sm:$0x1] }
 0x118   : > { %v389_v12 = vld [vmem:[#allocation2 + $0x6] ss:$32 sm:$0x20] }
 0x119   : > { %v342_v35 = vor.u32 %v341_v18, %v340_v25  ;;  %v427_v18 = vld [vmem:[#allocation2 + $0x8] ss:$32 sm:$0x4] }
 0x11a   : > { %v212_v26 = vpop.trf.xlu0  ;;  %v653_v21 = vld [vmem:[#allocation2 + $0x12] ss:$32 sm:$0x20] }
 0x11b   : > { %245 = vst.msk [vmem:[#allocation2 + $0xc0] sm:$0xff] %vm220_vm0, %v212_v26  ;;  %v343_v26 = vld [vmem:[#allocation2 + $0x4] ss:$32 sm:$0x10]  ;;  %v654_v34 = vor.u32 %v653_v21, %v652_v24 }
 0x11c   : > { %v344_v43 = vor.u32 %v343_v26, %v342_v35  ;;  %v429_v26 = vld [vmem:[#allocation2 + $0x8] ss:$32 sm:$0x8] }
 0x11e   : > { %v213_v27 = vpop.trf.xlu0  ;;  %v346_v52 = vor.u32 %v345_v40, %v344_v43  ;;  %v260_v40 = vld [vmem:[#allocation2] ss:$32 sm:$0x10] }
 0x11f   : > { %246 = vst.msk [vmem:[#allocation2 + $0xc8] sm:$0xff] %vm220_vm0, %v213_v27  ;;  %v361_v27 = vld [vmem:[#allocation2 + $0x5] ss:$32 sm:$0x4] }
 0x120   : > { %v362_v44 = vor.u32 %v361_v27, %v360_v31  ;;  %v446_v27 = vld [vmem:[#allocation2 + $0x9] ss:$32 sm:$0x1] }
 0x121   : > { %v449_v31 = vld [vmem:[#allocation2 + $0x9] ss:$32 sm:$0x4] }
 0x122   : > { %v214_v28 = vpop.trf.xlu0  ;;  %v281_v54 = vld [vmem:[#allocation2 + $0x1] ss:$32 sm:$0x40]  ;;  %v303_v11 = vld [vmem:[#allocation2 + $0x2] ss:$32 sm:$0x40] }
 0x123   : > { %247 = vst.msk [vmem:[#allocation2 + $0xd0] sm:$0xff] %vm220_vm0, %v214_v28  ;;  %v282_v2 = vor.u32 %v281_v54, %v280_v56  ;;  %v304_v22 = vor.u32 %v303_v11, %v302_v14  ;;  %v325_v29 = vld [vmem:[#allocation2 + $0x3] ss:$32 sm:$0x40] }
 0x124   : > { %v326_v41 = vor.u32 %v325_v29, %v324_v33  ;;  %v347_v48 = vld [vmem:[#allocation2 + $0x4] ss:$32 sm:$0x40]  ;;  %v385_v54 = vld [vmem:[#allocation2 + $0x6] ss:$32 sm:$0x8] }
 0x125   : > { %v254_v56 = vld [vmem:[#allocation2] ss:$32 sm:$0x2]  ;;  %v348_v60 = vor.u32 %v347_v48, %v346_v52  ;;  %v391_v19 = vld [vmem:[#allocation2 + $0x6] ss:$32 sm:$0x40] }
 0x126   : > { %v215_v30 = vpop.trf.xlu0  ;;  %v258_v14 = vld [vmem:[#allocation2] ss:$32 sm:$0x8] }
 0x127   : > { %248 = vst.msk [vmem:[#allocation2 + $0xd8] sm:$0xff] %vm220_vm0, %v215_v30 }
 0x12a   : > { %v216_v38 = vpop.trf.xlu0  ;;  %v655_v30 = vld [vmem:[#allocation2 + $0x12] ss:$32 sm:$0x40] }
 0x12b   : > { %249 = vst.msk [vmem:[#allocation2 + $0xe0] sm:$0xff] %vm220_vm0, %v216_v38  ;;  %v381_v38 = vld [vmem:[#allocation2 + $0x6] ss:$32 sm:$0x2]  ;;  %v656_v42 = vor.u32 %v655_v30, %v654_v34 }
 0x12c   : > { %v382_v49 = vor.u32 %v381_v38, %v380_v37  ;;  %v411_v30 = vld [vmem:[#allocation2 + $0x7] ss:$32 sm:$0x20]  ;;  %v469_v37 = vld [vmem:[#allocation2 + $0xa] ss:$32 sm:$0x2] }
 0x12d   : > { %v413_v34 = vld [vmem:[#allocation2 + $0x7] ss:$32 sm:$0x40] }
 0x12e   : > { %v217_v53 = vpop.trf.xlu0  ;;  %v384_v62 = vor.u32 %v383_v46, %v382_v49  ;;  %v451_v46 = vld [vmem:[#allocation2 + $0x9] ss:$32 sm:$0x8] }
 0x12f   : > { %250 = vst.msk [vmem:[#allocation2 + $0xe8] sm:$0xff] %vm220_vm0, %v217_v53  ;;  %v364_v53 = vor.u32 %v363_v36, %v362_v44  ;;  %v431_v36 = vld [vmem:[#allocation2 + $0x8] ss:$32 sm:$0x10] }
 0x130   : > { %v386_v7 = vor.u32 %v385_v54, %v384_v62  ;;  %v453_v54 = vld [vmem:[#allocation2 + $0x9] ss:$32 sm:$0x10] }
 0x131   : > { %v366_v61 = vor.u32 %v365_v45, %v364_v53  ;;  %v433_v45 = vld [vmem:[#allocation2 + $0x8] ss:$32 sm:$0x20] }
 0x132   : > { %v218_v9 = vpop.trf.xlu0  ;;  %v283_v10 = vld [vmem:[#allocation2 + $0x1] ss:$32 sm:$0x80]  ;;  %v305_v20 = vld [vmem:[#allocation2 + $0x2] ss:$32 sm:$0x80]  ;;  %v388_v16 = vor.u32 %v387_v3, %v386_v7 }
 0x133   : > { %251 = vst.msk [vmem:[#allocation2 + $0xf0] sm:$0xff] %vm220_vm0, %v218_v9  ;;  %v284_v13 = vor.u32 %v283_v10, %v282_v2  ;;  %v306_v32 = vor.u32 %v305_v20, %v304_v22  ;;  %v327_v39 = vld [vmem:[#allocation2 + $0x3] ss:$32 sm:$0x80]  ;;  %v368_v6 = vor.u32 %v367_v58, %v366_v61 }
 0x134   : > { %v328_v50 = vor.u32 %v327_v39, %v326_v41  ;;  %v349_v57 = vld [vmem:[#allocation2 + $0x4] ss:$32 sm:$0x80]  ;;  %v369_v2 = vld [vmem:[#allocation2 + $0x5] ss:$32 sm:$0x40]  ;;  %v390_v24 = vor.u32 %v389_v12, %v388_v16 }
 0x135   : > { %286 = vrot.lane.b32.xlu1 %v284_v13, %s1273_s18  ;;  %v350_v5 = vor.u32 %v349_v57, %v348_v60  ;;  %v407_v9 = vld [vmem:[#allocation2 + $0x7] ss:$32 sm:$0x8]  ;;  %v424_v10 = vld [vmem:[#allocation2 + $0x8] ss:$32 sm:$0x1]  ;;  %v255_v13 = vor.u32 %v254_v56, %v253_v1  ;;  %v370_v15 = vor.u32 %v369_v2, %v368_v6 }
 0x136   : > { %v219_v28 = vpop.trf.xlu0  ;;  %v371_v11 = vld [vmem:[#allocation2 + $0x5] ss:$32 sm:$0x80]  ;;  %v409_v20 = vld [vmem:[#allocation2 + $0x7] ss:$32 sm:$0x10]  ;;  %v426_v21 = vor.u32 %v425_v0, %v424_v10  ;;  %v408_v25 = vor.u32 %v407_v9, %v406_v17 }
 0x137   : > { %252 = vst.msk [vmem:[#allocation2 + $0xf8] sm:$0xff] %vm220_vm0, %v219_v28  ;;  %v257_v22 = vor.u32 %v256_v4, %v255_v13  ;;  %v372_v23 = vor.u32 %v371_v11, %v370_v15  ;;  %v447_v28 = vld [vmem:[#allocation2 + $0x9] ss:$32 sm:$0x2]  ;;  %s1290_s18 = smov 68  }
 0x138   : > { %v393_v29 = vld [vmem:[#allocation2 + $0x6] ss:$32 sm:$0x80]  ;;  %v410_v33 = vor.u32 %v409_v20, %v408_v25  ;;  %v428_v35 = vor.u32 %v427_v18, %v426_v21  ;;  %v448_v39 = vor.u32 %v447_v28, %v446_v27  ;;  %v262_v41 = vld [vmem:[#allocation2] ss:$32 sm:$0x20] }
 0x139   : > { %308 = vrot.lane.b32.xlu1 %v306_v32, %s1274_s27  ;;  %v392_v32 = vor.u32 %v391_v19, %v390_v24  ;;  %v259_v38 = vor.u32 %v258_v14, %v257_v22  ;;  %v415_v49 = vld [vmem:[#allocation2 + $0x7] ss:$32 sm:$0x80]  ;;  %v435_v57 = vld [vmem:[#allocation2 + $0x8] ss:$32 sm:$0x40] }
 0x13a   : > { %v657_v47 = vld [vmem:[#allocation2 + $0x12] ss:$32 sm:$0x80]  ;;  %v412_v43 = vor.u32 %v411_v30, %v410_v33  ;;  %v430_v44 = vor.u32 %v429_v26, %v428_v35  ;;  %v450_v53 = vor.u32 %v449_v31, %v448_v39  ;;  %v266_v60 = vld [vmem:[#allocation2] ss:$32 sm:$0x80] }
 0x13b   : > { %v658_v51 = vor.u32 %v657_v47, %v656_v42  ;;  %v394_v42 = vor.u32 %v393_v29, %v392_v32  ;;  %v468_v47 = vld [vmem:[#allocation2 + $0xa] ss:$32 sm:$0x1]  ;;  %v261_v48 = vor.u32 %v260_v40, %v259_v38  ;;  %v455_v0 = vld [vmem:[#allocation2 + $0x9] ss:$32 sm:$0x20] }
 0x13c   : > { %v432_v52 = vor.u32 %v431_v36, %v430_v44  ;;  %v470_v58 = vor.u32 %v469_v37, %v468_v47  ;;  %v452_v63 = vor.u32 %v451_v46, %v450_v53  ;;  %v473_v1 = vld [vmem:[#allocation2 + $0xa] ss:$32 sm:$0x8]  ;;  %v437_v3 = vld [vmem:[#allocation2 + $0x8] ss:$32 sm:$0x80] }
 0x13d   : > { %330 = vrot.lane.b32.xlu1 %v328_v50, %s1275_s29  ;;  %660 = vrot.lane.b32.xlu0 %v658_v51, %s1276_s30  ;;  %v264_v50 = vld [vmem:[#allocation2] ss:$32 sm:$0x40]  ;;  %v414_v51 = vor.u32 %v413_v34, %v412_v43  ;;  %v263_v56 = vor.u32 %v262_v41, %v261_v48  ;;  %v490_v4 = vld [vmem:[#allocation2 + $0xb] ss:$32 sm:$0x1] }
 0x13e   : > { %v434_v62 = vor.u32 %v433_v45, %v432_v52  ;;  %v454_v6 = vor.u32 %v453_v54, %v452_v63  ;;  %v472_v7 = vor.u32 %v471_v55, %v470_v58  ;;  %v457_v10 = vld [vmem:[#allocation2 + $0x9] ss:$32 sm:$0x40]  ;;  %v475_v11 = vld [vmem:[#allocation2 + $0xa] ss:$32 sm:$0x10]  ;;  %v492_v15 = vor.u32 %v491_v59, %v490_v4 }
 0x13f   : > { %v416_v61 = vor.u32 %v415_v49, %v414_v51  ;;  %v265_v2 = vor.u32 %v264_v50, %v263_v56  ;;  %v495_v16 = vld [vmem:[#allocation2 + $0xb] ss:$32 sm:$0x8]  ;;  %v513_v17 = vld [vmem:[#allocation2 + $0xc] ss:$32 sm:$0x2] }
 0x140   : > { %v456_v13 = vor.u32 %v455_v0, %v454_v6  ;;  %v474_v14 = vor.u32 %v473_v1, %v472_v7  ;;  %v459_v18 = vld [vmem:[#allocation2 + $0x9] ss:$32 sm:$0x80]  ;;  %v477_v19 = vld [vmem:[#allocation2 + $0xa] ss:$32 sm:$0x20] }
 0x141   : > { %352 = vrot.lane.b32.xlu1 %v350_v5, %s1277_s2  ;;  %v436_v5 = vor.u32 %v435_v57, %v434_v62  ;;  %v267_v9 = vor.u32 %v266_v60, %v265_v2  ;;  %v512_v20 = vld [vmem:[#allocation2 + $0xc] ss:$32 sm:$0x1]  ;;  %v479_v25 = vld [vmem:[#allocation2 + $0xa] ss:$32 sm:$0x40] }
 0x142   : > { %v458_v21 = vor.u32 %v457_v10, %v456_v13  ;;  %v476_v22 = vor.u32 %v475_v11, %v474_v14  ;;  %v515_v24 = vld [vmem:[#allocation2 + $0xc] ss:$32 sm:$0x4]  ;;  %v497_v26 = vld [vmem:[#allocation2 + $0xb] ss:$32 sm:$0x10]  ;;  %v514_v30 = vor.u32 %v513_v17, %v512_v20 }
 0x143   : > { %v438_v12 = vor.u32 %v437_v3, %v436_v5  ;;  %268 = vst.msk [vmem:[%s1470_s12] sm:$0xff] %vm220_vm0, %v267_v9  ;;  %v517_v31 = vld [vmem:[#allocation2 + $0xc] ss:$32 sm:$0x8]  ;;  %s1291_s27 = smov 76   ;;  %s1292_s29 = smov 80  }
 0x144   : > { %v460_v27 = vor.u32 %v459_v18, %v458_v21  ;;  %v478_v28 = vor.u32 %v477_v19, %v476_v22  ;;  %v535_v32 = vld [vmem:[#allocation2 + $0xd] ss:$32 sm:$0x2]  ;;  %v481_v33 = vld [vmem:[#allocation2 + $0xa] ss:$32 sm:$0x80]  ;;  %v516_v38 = vor.u32 %v515_v24, %v514_v30 }
 0x145   : > { %374 = vrot.lane.b32.xlu1 %v372_v23, %s1278_s3  ;;  %v494_v23 = vor.u32 %v493_v8, %v492_v15  ;;  %v499_v34 = vld [vmem:[#allocation2 + $0xb] ss:$32 sm:$0x20]  ;;  %v534_v35 = vld [vmem:[#allocation2 + $0xd] ss:$32 sm:$0x1] }
 0x146   : > { %v480_v36 = vor.u32 %v479_v25, %v478_v28  ;;  %v537_v39 = vld [vmem:[#allocation2 + $0xd] ss:$32 sm:$0x4]  ;;  %v501_v40 = vld [vmem:[#allocation2 + $0xb] ss:$32 sm:$0x40]  ;;  %v518_v44 = vor.u32 %v517_v31, %v516_v38  ;;  %v536_v45 = vor.u32 %v535_v32, %v534_v35 }
 0x147   : > { %v496_v29 = vor.u32 %v495_v16, %v494_v23  ;;  %v519_v41 = vld [vmem:[#allocation2 + $0xc] ss:$32 sm:$0x10]  ;;  %v539_v46 = vld [vmem:[#allocation2 + $0xd] ss:$32 sm:$0x8] }
 0x148   : > { %v557_v47 = vld [vmem:[#allocation2 + $0xe] ss:$32 sm:$0x2]  ;;  %v503_v48 = vld [vmem:[#allocation2 + $0xb] ss:$32 sm:$0x80]  ;;  %v520_v52 = vor.u32 %v519_v41, %v518_v44  ;;  %v538_v53 = vor.u32 %v537_v39, %v536_v45 }
 0x149   : > { %396 = vrot.lane.b32.xlu1 %v394_v42, %s1279_s4  ;;  %v498_v37 = vor.u32 %v497_v26, %v496_v29  ;;  %v482_v42 = vor.u32 %v481_v33, %v480_v36  ;;  %v521_v49 = vld [vmem:[#allocation2 + $0xc] ss:$32 sm:$0x20]  ;;  %v556_v50 = vld [vmem:[#allocation2 + $0xe] ss:$32 sm:$0x1] }
 0x14a   : > { %v559_v54 = vld [vmem:[#allocation2 + $0xe] ss:$32 sm:$0x4]  ;;  %v523_v55 = vld [vmem:[#allocation2 + $0xc] ss:$32 sm:$0x40]  ;;  %v522_v58 = vor.u32 %v521_v49, %v520_v52  ;;  %v540_v59 = vor.u32 %v539_v46, %v538_v53  ;;  %v558_v60 = vor.u32 %v557_v47, %v556_v50 }
 0x14b   : > { %v500_v43 = vor.u32 %v499_v34, %v498_v37  ;;  %v541_v56 = vld [vmem:[#allocation2 + $0xd] ss:$32 sm:$0x10]  ;;  %v579_v62 = vld [vmem:[#allocation2 + $0xf] ss:$32 sm:$0x2] }
 0x14c   : > { %v525_v63 = vld [vmem:[#allocation2 + $0xc] ss:$32 sm:$0x80]  ;;  %v543_v0 = vld [vmem:[#allocation2 + $0xd] ss:$32 sm:$0x20]  ;;  %v524_v2 = vor.u32 %v523_v55, %v522_v58  ;;  %v542_v3 = vor.u32 %v541_v56, %v540_v59  ;;  %v560_v4 = vor.u32 %v559_v54, %v558_v60 }
 0x14d   : > { %418 = vrot.lane.b32.xlu1 %v416_v61, %s1280_s5  ;;  %v502_v51 = vor.u32 %v501_v40, %v500_v43  ;;  %v561_v61 = vld [vmem:[#allocation2 + $0xe] ss:$32 sm:$0x8]  ;;  %v578_v1 = vld [vmem:[#allocation2 + $0xf] ss:$32 sm:$0x1] }
 0x14e   : > { %v581_v5 = vld [vmem:[#allocation2 + $0xf] ss:$32 sm:$0x4]  ;;  %v545_v6 = vld [vmem:[#allocation2 + $0xd] ss:$32 sm:$0x40]  ;;  %v526_v8 = vor.u32 %v525_v63, %v524_v2  ;;  %v544_v9 = vor.u32 %v543_v0, %v542_v3  ;;  %v562_v10 = vor.u32 %v561_v61, %v560_v4  ;;  %v580_v11 = vor.u32 %v579_v62, %v578_v1 }
 0x14f   : > { %v504_v57 = vor.u32 %v503_v48, %v502_v51  ;;  %v563_v7 = vld [vmem:[#allocation2 + $0xe] ss:$32 sm:$0x10]  ;;  %v601_v13 = vld [vmem:[#allocation2 + $0x10] ss:$32 sm:$0x2] }
 0x150   : > { %v547_v14 = vld [vmem:[#allocation2 + $0xd] ss:$32 sm:$0x80]  ;;  %v565_v15 = vld [vmem:[#allocation2 + $0xe] ss:$32 sm:$0x20]  ;;  %v546_v17 = vor.u32 %v545_v6, %v544_v9  ;;  %v564_v18 = vor.u32 %v563_v7, %v562_v10  ;;  %v582_v19 = vor.u32 %v581_v5, %v580_v11 }
 0x151   : > { %440 = vrot.lane.b32.xlu1 %v438_v12, %s1281_s13  ;;  %v583_v12 = vld [vmem:[#allocation2 + $0xf] ss:$32 sm:$0x8]  ;;  %v600_v16 = vld [vmem:[#allocation2 + $0x10] ss:$32 sm:$0x1] }
 0x152   : > { %v603_v20 = vld [vmem:[#allocation2 + $0x10] ss:$32 sm:$0x4]  ;;  %v567_v21 = vld [vmem:[#allocation2 + $0xe] ss:$32 sm:$0x40]  ;;  %v548_v23 = vor.u32 %v547_v14, %v546_v17  ;;  %v566_v24 = vor.u32 %v565_v15, %v564_v18  ;;  %v584_v25 = vor.u32 %v583_v12, %v582_v19  ;;  %v602_v26 = vor.u32 %v601_v13, %v600_v16 }
 0x153   : > { %v585_v22 = vld [vmem:[#allocation2 + $0xf] ss:$32 sm:$0x10]  ;;  %v623_v28 = vld [vmem:[#allocation2 + $0x11] ss:$32 sm:$0x2] }
 0x154   : > { %v569_v29 = vld [vmem:[#allocation2 + $0xe] ss:$32 sm:$0x80]  ;;  %v587_v30 = vld [vmem:[#allocation2 + $0xf] ss:$32 sm:$0x20]  ;;  %v568_v32 = vor.u32 %v567_v21, %v566_v24  ;;  %v586_v33 = vor.u32 %v585_v22, %v584_v25  ;;  %v604_v34 = vor.u32 %v603_v20, %v602_v26 }
 0x155   : > { %462 = vrot.lane.b32.xlu1 %v460_v27, %s1282_s15  ;;  %v605_v27 = vld [vmem:[#allocation2 + $0x10] ss:$32 sm:$0x8]  ;;  %v622_v31 = vld [vmem:[#allocation2 + $0x11] ss:$32 sm:$0x1] }
 0x156   : > { %v625_v35 = vld [vmem:[#allocation2 + $0x11] ss:$32 sm:$0x4]  ;;  %v589_v36 = vld [vmem:[#allocation2 + $0xf] ss:$32 sm:$0x40]  ;;  %v570_v38 = vor.u32 %v569_v29, %v568_v32  ;;  %v588_v39 = vor.u32 %v587_v30, %v586_v33  ;;  %v606_v40 = vor.u32 %v605_v27, %v604_v34  ;;  %v624_v41 = vor.u32 %v623_v28, %v622_v31 }
 0x157   : > { %v607_v37 = vld [vmem:[#allocation2 + $0x10] ss:$32 sm:$0x10]  ;;  %v667_v43 = vld [vmem:[#allocation2 + $0x13] ss:$32 sm:$0x2] }
 0x158   : > { %v591_v44 = vld [vmem:[#allocation2 + $0xf] ss:$32 sm:$0x80]  ;;  %v609_v45 = vld [vmem:[#allocation2 + $0x10] ss:$32 sm:$0x20]  ;;  %v590_v47 = vor.u32 %v589_v36, %v588_v39  ;;  %v608_v48 = vor.u32 %v607_v37, %v606_v40  ;;  %v626_v49 = vor.u32 %v625_v35, %v624_v41 }
 0x159   : > { %484 = vrot.lane.b32.xlu1 %v482_v42, %s1283_s16  ;;  %v627_v42 = vld [vmem:[#allocation2 + $0x11] ss:$32 sm:$0x8]  ;;  %v666_v46 = vld [vmem:[#allocation2 + $0x13] ss:$32 sm:$0x1] }
 0x15a   : > { %v669_v50 = vld [vmem:[#allocation2 + $0x13] ss:$32 sm:$0x4]  ;;  %v611_v51 = vld [vmem:[#allocation2 + $0x10] ss:$32 sm:$0x40]  ;;  %v592_v53 = vor.u32 %v591_v44, %v590_v47  ;;  %v610_v54 = vor.u32 %v609_v45, %v608_v48  ;;  %v628_v55 = vor.u32 %v627_v42, %v626_v49  ;;  %v668_v56 = vor.u32 %v667_v43, %v666_v46 }
 0x15b   : > { %v629_v52 = vld [vmem:[#allocation2 + $0x11] ss:$32 sm:$0x10]  ;;  %v689_v58 = vld [vmem:[#allocation2 + $0x14] ss:$32 sm:$0x2] }
 0x15c   : > { %v613_v59 = vld [vmem:[#allocation2 + $0x10] ss:$32 sm:$0x80]  ;;  %v631_v60 = vld [vmem:[#allocation2 + $0x11] ss:$32 sm:$0x20]  ;;  %v612_v62 = vor.u32 %v611_v51, %v610_v54  ;;  %v630_v63 = vor.u32 %v629_v52, %v628_v55  ;;  %v670_v0 = vor.u32 %v669_v50, %v668_v56 }
 0x15d   : > { %506 = vrot.lane.b32.xlu1 %v504_v57, %s1284_s17  ;;  %v671_v57 = vld [vmem:[#allocation2 + $0x13] ss:$32 sm:$0x8]  ;;  %v688_v61 = vld [vmem:[#allocation2 + $0x14] ss:$32 sm:$0x1] }
 0x15e   : > { %v691_v1 = vld [vmem:[#allocation2 + $0x14] ss:$32 sm:$0x4]  ;;  %v633_v2 = vld [vmem:[#allocation2 + $0x11] ss:$32 sm:$0x40]  ;;  %v614_v4 = vor.u32 %v613_v59, %v612_v62  ;;  %v632_v5 = vor.u32 %v631_v60, %v630_v63  ;;  %v672_v6 = vor.u32 %v671_v57, %v670_v0  ;;  %v690_v7 = vor.u32 %v689_v58, %v688_v61 }
 0x15f   : > { %v673_v3 = vld [vmem:[#allocation2 + $0x13] ss:$32 sm:$0x10]  ;;  %v711_v9 = vld [vmem:[#allocation2 + $0x15] ss:$32 sm:$0x2] }
 0x160   : > { %v635_v10 = vld [vmem:[#allocation2 + $0x11] ss:$32 sm:$0x80]  ;;  %v675_v11 = vld [vmem:[#allocation2 + $0x13] ss:$32 sm:$0x20]  ;;  %v634_v13 = vor.u32 %v633_v2, %v632_v5  ;;  %v674_v14 = vor.u32 %v673_v3, %v672_v6  ;;  %v692_v15 = vor.u32 %v691_v1, %v690_v7 }
 0x161   : > { %528 = vrot.lane.b32.xlu1 %v526_v8, %s1285_s22  ;;  %v693_v8 = vld [vmem:[#allocation2 + $0x14] ss:$32 sm:$0x8]  ;;  %v710_v12 = vld [vmem:[#allocation2 + $0x15] ss:$32 sm:$0x1] }
 0x162   : > { %v713_v16 = vld [vmem:[#allocation2 + $0x15] ss:$32 sm:$0x4]  ;;  %v677_v17 = vld [vmem:[#allocation2 + $0x13] ss:$32 sm:$0x40]  ;;  %v636_v19 = vor.u32 %v635_v10, %v634_v13  ;;  %v676_v20 = vor.u32 %v675_v11, %v674_v14  ;;  %v694_v21 = vor.u32 %v693_v8, %v692_v15  ;;  %v712_v22 = vor.u32 %v711_v9, %v710_v12 }
 0x163   : > { %v695_v18 = vld [vmem:[#allocation2 + $0x14] ss:$32 sm:$0x10]  ;;  %v733_v24 = vld [vmem:[#allocation2 + $0x16] ss:$32 sm:$0x2] }
 0x164   : > { %v679_v25 = vld [vmem:[#allocation2 + $0x13] ss:$32 sm:$0x80]  ;;  %v697_v26 = vld [vmem:[#allocation2 + $0x14] ss:$32 sm:$0x20]  ;;  %v678_v28 = vor.u32 %v677_v17, %v676_v20  ;;  %v696_v29 = vor.u32 %v695_v18, %v694_v21  ;;  %v714_v30 = vor.u32 %v713_v16, %v712_v22 }
 0x165   : > { %550 = vrot.lane.b32.xlu1 %v548_v23, %s1286_s23  ;;  %v715_v23 = vld [vmem:[#allocation2 + $0x15] ss:$32 sm:$0x8]  ;;  %v732_v27 = vld [vmem:[#allocation2 + $0x16] ss:$32 sm:$0x1] }
 0x166   : > { %v735_v31 = vld [vmem:[#allocation2 + $0x16] ss:$32 sm:$0x4]  ;;  %v699_v32 = vld [vmem:[#allocation2 + $0x14] ss:$32 sm:$0x40]  ;;  %v680_v34 = vor.u32 %v679_v25, %v678_v28  ;;  %v698_v35 = vor.u32 %v697_v26, %v696_v29  ;;  %v716_v36 = vor.u32 %v715_v23, %v714_v30  ;;  %v734_v37 = vor.u32 %v733_v24, %v732_v27 }
 0x167   : > { %v717_v33 = vld [vmem:[#allocation2 + $0x15] ss:$32 sm:$0x10]  ;;  %v755_v39 = vld [vmem:[#allocation2 + $0x17] ss:$32 sm:$0x2] }
 0x168   : > { %v701_v40 = vld [vmem:[#allocation2 + $0x14] ss:$32 sm:$0x80]  ;;  %v719_v41 = vld [vmem:[#allocation2 + $0x15] ss:$32 sm:$0x20]  ;;  %v700_v43 = vor.u32 %v699_v32, %v698_v35  ;;  %v718_v44 = vor.u32 %v717_v33, %v716_v36  ;;  %v736_v45 = vor.u32 %v735_v31, %v734_v37 }
 0x169   : > { %572 = vrot.lane.b32.xlu1 %v570_v38, %s1287_s25  ;;  %v737_v38 = vld [vmem:[#allocation2 + $0x16] ss:$32 sm:$0x8]  ;;  %v754_v42 = vld [vmem:[#allocation2 + $0x17] ss:$32 sm:$0x1] }
 0x16a   : > { %v757_v46 = vld [vmem:[#allocation2 + $0x17] ss:$32 sm:$0x4]  ;;  %v721_v47 = vld [vmem:[#allocation2 + $0x15] ss:$32 sm:$0x40]  ;;  %v702_v49 = vor.u32 %v701_v40, %v700_v43  ;;  %v720_v50 = vor.u32 %v719_v41, %v718_v44  ;;  %v738_v51 = vor.u32 %v737_v38, %v736_v45  ;;  %v756_v52 = vor.u32 %v755_v39, %v754_v42 }
 0x16b   : > { %v739_v48 = vld [vmem:[#allocation2 + $0x16] ss:$32 sm:$0x10]  ;;  %v777_v54 = vld [vmem:[#allocation2 + $0x18] ss:$32 sm:$0x2] }
 0x16c   : > { %v723_v55 = vld [vmem:[#allocation2 + $0x15] ss:$32 sm:$0x80]  ;;  %v741_v56 = vld [vmem:[#allocation2 + $0x16] ss:$32 sm:$0x20]  ;;  %v722_v58 = vor.u32 %v721_v47, %v720_v50  ;;  %v740_v59 = vor.u32 %v739_v48, %v738_v51  ;;  %v758_v60 = vor.u32 %v757_v46, %v756_v52 }
 0x16d   : > { %594 = vrot.lane.b32.xlu1 %v592_v53, %s1288_s26  ;;  %v759_v53 = vld [vmem:[#allocation2 + $0x17] ss:$32 sm:$0x8]  ;;  %v776_v57 = vld [vmem:[#allocation2 + $0x18] ss:$32 sm:$0x1] }
 0x16e   : > { %v779_v61 = vld [vmem:[#allocation2 + $0x18] ss:$32 sm:$0x4]  ;;  %v743_v62 = vld [vmem:[#allocation2 + $0x16] ss:$32 sm:$0x40]  ;;  %v724_v0 = vor.u32 %v723_v55, %v722_v58  ;;  %v742_v1 = vor.u32 %v741_v56, %v740_v59  ;;  %v760_v2 = vor.u32 %v759_v53, %v758_v60  ;;  %v778_v3 = vor.u32 %v777_v54, %v776_v57 }
 0x16f   : > { %v761_v63 = vld [vmem:[#allocation2 + $0x17] ss:$32 sm:$0x10]  ;;  %v799_v5 = vld [vmem:[#allocation2 + $0x19] ss:$32 sm:$0x2] }
 0x170   : > { %v745_v6 = vld [vmem:[#allocation2 + $0x16] ss:$32 sm:$0x80]  ;;  %v763_v7 = vld [vmem:[#allocation2 + $0x17] ss:$32 sm:$0x20]  ;;  %v744_v9 = vor.u32 %v743_v62, %v742_v1  ;;  %v762_v10 = vor.u32 %v761_v63, %v760_v2  ;;  %v780_v11 = vor.u32 %v779_v61, %v778_v3 }
 0x171   : > { %616 = vrot.lane.b32.xlu1 %v614_v4, %s1289_s28  ;;  %v781_v4 = vld [vmem:[#allocation2 + $0x18] ss:$32 sm:$0x8]  ;;  %v798_v8 = vld [vmem:[#allocation2 + $0x19] ss:$32 sm:$0x1] }
 0x172   : > { %s1293_s30 = smov 84   ;;  %v801_v12 = vld [vmem:[#allocation2 + $0x19] ss:$32 sm:$0x4]  ;;  %v746_v15 = vor.u32 %v745_v6, %v744_v9  ;;  %v764_v16 = vor.u32 %v763_v7, %v762_v10  ;;  %v782_v17 = vor.u32 %v781_v4, %v780_v11  ;;  %v800_v18 = vor.u32 %v799_v5, %v798_v8  ;;  %s1294_s2 = smov 88  }
 0x173   : > { %v765_v13 = vld [vmem:[#allocation2 + $0x17] ss:$32 sm:$0x40]  ;;  %v783_v14 = vld [vmem:[#allocation2 + $0x18] ss:$32 sm:$0x10] }
 0x174   : > { %v821_v20 = vld [vmem:[#allocation2 + $0x1a] ss:$32 sm:$0x2]  ;;  %v767_v21 = vld [vmem:[#allocation2 + $0x17] ss:$32 sm:$0x80]  ;;  %v766_v24 = vor.u32 %v765_v13, %v764_v16  ;;  %v784_v25 = vor.u32 %v783_v14, %v782_v17  ;;  %v802_v26 = vor.u32 %v801_v12, %v800_v18 }
 0x175   : > { %638 = vrot.lane.b32.xlu1 %v636_v19, %s1290_s18  ;;  %v803_v19 = vld [vmem:[#allocation2 + $0x19] ss:$32 sm:$0x8]  ;;  %v785_v22 = vld [vmem:[#allocation2 + $0x18] ss:$32 sm:$0x20] }
 0x176   : > { %v820_v23 = vld [vmem:[#allocation2 + $0x1a] ss:$32 sm:$0x1]  ;;  %v787_v28 = vld [vmem:[#allocation2 + $0x18] ss:$32 sm:$0x40]  ;;  %v768_v30 = vor.u32 %v767_v21, %v766_v24  ;;  %v786_v31 = vor.u32 %v785_v22, %v784_v25  ;;  %v804_v32 = vor.u32 %v803_v19, %v802_v26 }
 0x177   : > { %v823_v27 = vld [vmem:[#allocation2 + $0x1a] ss:$32 sm:$0x4]  ;;  %v805_v29 = vld [vmem:[#allocation2 + $0x19] ss:$32 sm:$0x10]  ;;  %v822_v33 = vor.u32 %v821_v20, %v820_v23 }
 0x178   : > { %v843_v35 = vld [vmem:[#allocation2 + $0x1b] ss:$32 sm:$0x2]  ;;  %v789_v36 = vld [vmem:[#allocation2 + $0x18] ss:$32 sm:$0x80]  ;;  %v788_v39 = vor.u32 %v787_v28, %v786_v31  ;;  %v806_v40 = vor.u32 %v805_v29, %v804_v32 }
 0x179   : > { %682 = vrot.lane.b32.xlu1 %v680_v34, %s1291_s27  ;;  %v825_v34 = vld [vmem:[#allocation2 + $0x1a] ss:$32 sm:$0x8]  ;;  %v807_v37 = vld [vmem:[#allocation2 + $0x19] ss:$32 sm:$0x20]  ;;  %v824_v41 = vor.u32 %v823_v27, %v822_v33 }
 0x17a   : > { %v842_v38 = vld [vmem:[#allocation2 + $0x1b] ss:$32 sm:$0x1]  ;;  %s1295_s3 = smov 92   ;;  %v790_v45 = vor.u32 %v789_v36, %v788_v39  ;;  %v808_v46 = vor.u32 %v807_v37, %v806_v40  ;;  %s1296_s4 = smov 96   ;;  %vm619_vm0 = vcmask 556544  }
 0x17b   : > { %v845_v42 = vld [vmem:[#allocation2 + $0x1b] ss:$32 sm:$0x4]  ;;  %v809_v43 = vld [vmem:[#allocation2 + $0x19] ss:$32 sm:$0x40]  ;;  %v826_v47 = vor.u32 %v825_v34, %v824_v41  ;;  %v844_v48 = vor.u32 %v843_v35, %v842_v38 }
 0x17c   : > { %v827_v44 = vld [vmem:[#allocation2 + $0x1a] ss:$32 sm:$0x10]  ;;  %v865_v50 = vld [vmem:[#allocation2 + $0x1c] ss:$32 sm:$0x2]  ;;  %v810_v54 = vor.u32 %v809_v43, %v808_v46 }
 0x17d   : > { %704 = vrot.lane.b32.xlu1 %v702_v49, %s1292_s29  ;;  %v847_v49 = vld [vmem:[#allocation2 + $0x1b] ss:$32 sm:$0x8]  ;;  %v811_v51 = vld [vmem:[#allocation2 + $0x19] ss:$32 sm:$0x80]  ;;  %v828_v55 = vor.u32 %v827_v44, %v826_v47  ;;  %v846_v56 = vor.u32 %v845_v42, %v844_v48 }
 0x17e   : > { %v829_v52 = vld [vmem:[#allocation2 + $0x1a] ss:$32 sm:$0x20]  ;;  %v864_v53 = vld [vmem:[#allocation2 + $0x1c] ss:$32 sm:$0x1]  ;;  %v812_v60 = vor.u32 %v811_v51, %v810_v54 }
 0x17f   : > { %v849_v57 = vld [vmem:[#allocation2 + $0x1b] ss:$32 sm:$0x10]  ;;  %v867_v58 = vld [vmem:[#allocation2 + $0x1c] ss:$32 sm:$0x4]  ;;  %v830_v61 = vor.u32 %v829_v52, %v828_v55  ;;  %v848_v62 = vor.u32 %v847_v49, %v846_v56 }
 0x180   : > { %v831_v59 = vld [vmem:[#allocation2 + $0x1a] ss:$32 sm:$0x40]  ;;  %v851_v63 = vld [vmem:[#allocation2 + $0x1b] ss:$32 sm:$0x20] }
 0x181   : > { %726 = vrot.lane.b32.xlu1 %v724_v0, %s1293_s30  ;;  %v866_v0 = vor.u32 %v865_v50, %v864_v53  ;;  %v869_v1 = vld [vmem:[#allocation2 + $0x1c] ss:$32 sm:$0x8]  ;;  %v833_v2 = vld [vmem:[#allocation2 + $0x1a] ss:$32 sm:$0x80]  ;;  %v832_v4 = vor.u32 %v831_v59, %v830_v61  ;;  %v850_v5 = vor.u32 %v849_v57, %v848_v62 }
 0x182   : > { %v887_v3 = vld [vmem:[#allocation2 + $0x1d] ss:$32 sm:$0x2]  ;;  %s1297_s5 = smov 100   ;;  %s1298_s13 = smov 104  }
 0x183   : > { %v868_v6 = vor.u32 %v867_v58, %v866_v0  ;;  %v871_v7 = vld [vmem:[#allocation2 + $0x1c] ss:$32 sm:$0x10]  ;;  %v886_v8 = vld [vmem:[#allocation2 + $0x1d] ss:$32 sm:$0x1]  ;;  %v834_v12 = vor.u32 %v833_v2, %v832_v4  ;;  %v852_v13 = vor.u32 %v851_v63, %v850_v5 }
 0x184   : > { %v853_v9 = vld [vmem:[#allocation2 + $0x1b] ss:$32 sm:$0x40]  ;;  %v873_v10 = vld [vmem:[#allocation2 + $0x1c] ss:$32 sm:$0x20] }
 0x185   : > { %748 = vrot.lane.b32.xlu1 %v746_v15, %s1294_s2  ;;  %v889_v11 = vld [vmem:[#allocation2 + $0x1d] ss:$32 sm:$0x4]  ;;  %v870_v14 = vor.u32 %v869_v1, %v868_v6  ;;  %v888_v15 = vor.u32 %v887_v3, %v886_v8  ;;  %v855_v17 = vld [vmem:[#allocation2 + $0x1b] ss:$32 sm:$0x80]  ;;  %v854_v19 = vor.u32 %v853_v9, %v852_v13 }
 0x186   : > { %v891_v16 = vld [vmem:[#allocation2 + $0x1d] ss:$32 sm:$0x8]  ;;  %v909_v18 = vld [vmem:[#allocation2 + $0x1e] ss:$32 sm:$0x2] }
 0x187   : > { %v872_v20 = vor.u32 %v871_v7, %v870_v14  ;;  %v875_v21 = vld [vmem:[#allocation2 + $0x1c] ss:$32 sm:$0x40]  ;;  %v890_v22 = vor.u32 %v889_v11, %v888_v15  ;;  %v893_v23 = vld [vmem:[#allocation2 + $0x1d] ss:$32 sm:$0x10]  ;;  %v856_v26 = vor.u32 %v855_v17, %v854_v19 }
 0x188   : > { %v908_v24 = vld [vmem:[#allocation2 + $0x1e] ss:$32 sm:$0x1]  ;;  %v877_v28 = vld [vmem:[#allocation2 + $0x1c] ss:$32 sm:$0x80] }
 0x189   : > { %770 = vrot.lane.b32.xlu1 %v768_v30, %s1295_s3  ;;  %v911_v25 = vld [vmem:[#allocation2 + $0x1e] ss:$32 sm:$0x4]  ;;  %v874_v27 = vor.u32 %v873_v10, %v872_v20  ;;  %v892_v29 = vor.u32 %v891_v16, %v890_v22  ;;  %v895_v30 = vld [vmem:[#allocation2 + $0x1d] ss:$32 sm:$0x20]  ;;  %v910_v31 = vor.u32 %v909_v18, %v908_v24 }
 0x18a   : > { %v913_v32 = vld [vmem:[#allocation2 + $0x1e] ss:$32 sm:$0x8]  ;;  %v931_v33 = vld [vmem:[#allocation2 + $0x1f] ss:$32 sm:$0x2] }
 0x18b   : > { %s1299_s15 = smov 108   ;;  %v876_v34 = vor.u32 %v875_v21, %v874_v27  ;;  %v894_v35 = vor.u32 %v893_v23, %v892_v29  ;;  %v897_v36 = vld [vmem:[#allocation2 + $0x1d] ss:$32 sm:$0x40]  ;;  %v912_v37 = vor.u32 %v911_v25, %v910_v31  ;;  %s1300_s16 = smov 112  }
 0x18c   : > { %v915_v38 = vld [vmem:[#allocation2 + $0x1e] ss:$32 sm:$0x10]  ;;  %v930_v39 = vld [vmem:[#allocation2 + $0x1f] ss:$32 sm:$0x1] }
 0x18d   : > { %792 = vrot.lane.b32.xlu1 %v790_v45, %s1296_s4  ;;  %v933_v40 = vld [vmem:[#allocation2 + $0x1f] ss:$32 sm:$0x4]  ;;  %v878_v41 = vor.u32 %v877_v28, %v876_v34  ;;  %v896_v42 = vor.u32 %v895_v30, %v894_v35  ;;  %v899_v43 = vld [vmem:[#allocation2 + $0x1d] ss:$32 sm:$0x80]  ;;  %v914_v44 = vor.u32 %v913_v32, %v912_v37  ;;  %v932_v45 = vor.u32 %v931_v33, %v930_v39 }
 0x18e   : > { %v917_v46 = vld [vmem:[#allocation2 + $0x1e] ss:$32 sm:$0x20]  ;;  %v935_v47 = vld [vmem:[#allocation2 + $0x1f] ss:$32 sm:$0x8] }
 0x18f   : > { %v898_v48 = vor.u32 %v897_v36, %v896_v42  ;;  %v916_v49 = vor.u32 %v915_v38, %v914_v44  ;;  %v934_v50 = vor.u32 %v933_v40, %v932_v45  ;;  %v919_v51 = vld [vmem:[#allocation2 + $0x1e] ss:$32 sm:$0x40]  ;;  %v937_v52 = vld [vmem:[#allocation2 + $0x1f] ss:$32 sm:$0x10] }
 0x190   : > { %v921_v56 = vld [vmem:[#allocation2 + $0x1e] ss:$32 sm:$0x80]  ;;  %v939_v57 = vld [vmem:[#allocation2 + $0x1f] ss:$32 sm:$0x20] }
 0x191   : > { %814 = vrot.lane.b32.xlu1 %v812_v60, %s1297_s5  ;;  %v900_v53 = vor.u32 %v899_v43, %v898_v48  ;;  %v918_v54 = vor.u32 %v917_v46, %v916_v49  ;;  %v936_v55 = vor.u32 %v935_v47, %v934_v50  ;;  %s1301_s17 = smov 116   ;;  %v941_v60 = vld [vmem:[#allocation2 + $0x1f] ss:$32 sm:$0x40]  ;;  %s1302_s22 = smov 120  }
 0x192   : > { %v943_v63 = vld [vmem:[#allocation2 + $0x1f] ss:$32 sm:$0x80]  ;;  %s1303_s23 = smov 124   ;;  %s1059_s25 = sshll.u32 %s1262_s9, 7 }
 0x193   : > { %v920_v58 = vor.u32 %v919_v51, %v918_v54  ;;  %v938_v59 = vor.u32 %v937_v52, %v936_v55  ;;  %s966_s26 = sshll.u32 %s1470_s12, 4  ;;  %s1509_s27 = scalar_lea.hbm %s1560_s1, %s1059_s25  ;;  %s1511_s26 = int_to_ptr.vmem [resolvable:$true] %s966_s26 }
 0x194   : > { %s952_s29 = scalar_lea.sflag [#allocation5], %s1426_s24  ;;  %s1188_s30 = scalar_lea.vmem %s1511_s26, 128 }
 0x195   : > { %836 = vrot.lane.b32.xlu1 %v834_v12, %s1298_s13  ;;  %v922_v61 = vor.u32 %v921_v56, %v920_v58  ;;  %v940_v62 = vor.u32 %v939_v57, %v938_v59  ;;  %p1189_p8 = scmp.ne.s32.totalorder %s1511_s26, %s1188_s30  ;;  %s1304_s9 = smov [#allocation6]  }
 0x196   : > { %s1192_s2 = sshll.u32 %s1304_s9, 4  ;;  %s1193_s2 = int_to_ptr.vmem [resolvable:$false] %s1192_s2 }
 0x197   : > { %v942_v0 = vor.u32 %v941_v60, %v940_v62  ;;  %p1190_p11 = pnand %p1189_p8, %p1569_p9  ;;  %s1194_s3 = scalar_lea.vmem %s1193_s2, 256 }
 0x198   : > { %p1195_p7 = scmp.lt.s32.totalorder %s1511_s26, %s1193_s2  ;;  %p1196_p13 = scmp.lt.s32.totalorder %s1194_s3, %s1188_s30 }
 0x199   : > { %858 = vrot.lane.b32.xlu1 %v856_v26, %s1299_s15  ;;  %v944_v2 = vor.u32 %v943_v63, %v942_v0  ;;  %p1191_p0 = pneg %p1190_p11 }
 0x19a   : > { %p1197_p3 = por %p1196_p13, %p1195_p7 }
 0x19c   : > { %p1198_p6 = pnand %p1197_p3, %p1191_p0 }
 0x19d   : > { %880 = vrot.lane.b32.xlu1 %v878_v41, %s1300_s16 }
 0x1a1   : > { %902 = vrot.lane.b32.xlu1 %v900_v53, %s1301_s17 }
 0x1a5   : > { %924 = vrot.lane.b32.xlu1 %v922_v61, %s1302_s22 }
 0x1a7   : > { %v287_v1 = vpop.permute.xlu1 %286 }
 0x1a8   : > { %290 = vst.msk [vmem:[%s1470_s12] sm:$0xff] %vm289_vm1, %v287_v1  ;;  %vm641_vm1 = vcmask 589344  }
 0x1a9   : > { %946 = vrot.lane.b32.xlu1 %v944_v2, %s1303_s23 }
 0x1ab   : > { %v309_v3 = vpop.permute.xlu1 %308 }
 0x1ac   : > { %312 = vst.msk [vmem:[%s1470_s12] sm:$0xff] %vm311_vm2, %v309_v3  ;;  %vm663_vm2 = vcmask 622144  }
 0x1af   : > { %v331_v4 = vpop.permute.xlu1 %330  ;;  %v661_v19 = vpop.permute.xlu0 %660 }
 0x1b0   : > { %334 = vst.msk [vmem:[%s1470_s12] sm:$0xff] %vm333_vm3, %v331_v4  ;;  %vm685_vm3 = vcmask 654944  }
 0x1b3   : > { %v353_v5 = vpop.permute.xlu1 %352 }
 0x1b4   : > { %356 = vst.msk [vmem:[%s1470_s12] sm:$0xff] %vm355_vm4, %v353_v5  ;;  %vm707_vm4 = vcmask 687744  }
 0x1b7   : > { %v375_v6 = vpop.permute.xlu1 %374 }
 0x1b8   : > { %378 = vst.msk [vmem:[%s1470_s12] sm:$0xff] %vm377_vm5, %v375_v6  ;;  %vm729_vm5 = vcmask 720544  }
 0x1bb   : > { %v397_v7 = vpop.permute.xlu1 %396 }
 0x1bc   : > { %400 = vst.msk [vmem:[%s1470_s12] sm:$0xff] %vm399_vm6, %v397_v7  ;;  %vm751_vm6 = vcmask 753344  }
 0x1bf   : > { %v419_v8 = vpop.permute.xlu1 %418 }
 0x1c0   : > { %422 = vst.msk [vmem:[%s1470_s12] sm:$0xff] %vm421_vm7, %v419_v8  ;;  %vm773_vm7 = vcmask 786144  }
 0x1c3   : > { %v441_v9 = vpop.permute.xlu1 %440 }
 0x1c4   : > { %444 = vst.msk [vmem:[%s1470_s12] sm:$0xff] %vm443_vm8, %v441_v9  ;;  %vm795_vm8 = vcmask 818944  }
 0x1c7   : > { %v463_v10 = vpop.permute.xlu1 %462 }
 0x1c8   : > { %466 = vst.msk [vmem:[%s1470_s12] sm:$0xff] %vm465_vm9, %v463_v10  ;;  %vm817_vm9 = vcmask 851744  }
 0x1cb   : > { %v485_v11 = vpop.permute.xlu1 %484 }
 0x1cc   : > { %488 = vst.msk [vmem:[%s1470_s12] sm:$0xff] %vm487_vm10, %v485_v11  ;;  %vm839_vm10 = vcmask 884544  }
 0x1cf   : > { %v507_v12 = vpop.permute.xlu1 %506 }
 0x1d0   : > { %510 = vst.msk [vmem:[%s1470_s12] sm:$0xff] %vm509_vm11, %v507_v12  ;;  %vm861_vm11 = vcmask 917344  }
 0x1d3   : > { %v529_v13 = vpop.permute.xlu1 %528 }
 0x1d4   : > { %532 = vst.msk [vmem:[%s1470_s12] sm:$0xff] %vm531_vm12, %v529_v13  ;;  %vm883_vm12 = vcmask 950144  }
 0x1d7   : > { %v551_v14 = vpop.permute.xlu1 %550 }
 0x1d8   : > { %554 = vst.msk [vmem:[%s1470_s12] sm:$0xff] %vm553_vm13, %v551_v14  ;;  %vm905_vm13 = vcmask 982944  }
 0x1db   : > { %v573_v15 = vpop.permute.xlu1 %572 }
 0x1dc   : > { %576 = vst.msk [vmem:[%s1470_s12] sm:$0xff] %vm575_vm14, %v573_v15  ;;  %vm927_vm14 = vcmask 1015744  }
 0x1df   : > { %v595_v16 = vpop.permute.xlu1 %594 }
 0x1e0   : > { %598 = vst.msk [vmem:[%s1470_s12] sm:$0xff] %vm597_vm15, %v595_v16  ;;  %vm949_vm15 = vcmask 1048544  }
 0x1e3   : > { %v617_v17 = vpop.permute.xlu1 %616 }
 0x1e4   : > { %620 = vst.msk [vmem:[%s1470_s12] sm:$0xff] %vm619_vm0, %v617_v17 }
 0x1e7   : > { %v639_v18 = vpop.permute.xlu1 %638 }
 0x1e8   : > { %642 = vst.msk [vmem:[%s1470_s12] sm:$0xff] %vm641_vm1, %v639_v18 }
 0x1e9   : > { %664 = vst.msk [vmem:[%s1470_s12] sm:$0xff] %vm663_vm2, %v661_v19 }
 0x1eb   : > { %v683_v20 = vpop.permute.xlu1 %682 }
 0x1ec   : > { %686 = vst.msk [vmem:[%s1470_s12] sm:$0xff] %vm685_vm3, %v683_v20 }
 0x1ef   : > { %v705_v21 = vpop.permute.xlu1 %704 }
 0x1f0   : > { %708 = vst.msk [vmem:[%s1470_s12] sm:$0xff] %vm707_vm4, %v705_v21 }
 0x1f3   : > { %v727_v22 = vpop.permute.xlu1 %726 }
 0x1f4   : > { %730 = vst.msk [vmem:[%s1470_s12] sm:$0xff] %vm729_vm5, %v727_v22 }
 0x1f7   : > { %v749_v23 = vpop.permute.xlu1 %748 }
 0x1f8   : > { %752 = vst.msk [vmem:[%s1470_s12] sm:$0xff] %vm751_vm6, %v749_v23 }
 0x1fb   : > { %v771_v24 = vpop.permute.xlu1 %770 }
 0x1fc   : > { %774 = vst.msk [vmem:[%s1470_s12] sm:$0xff] %vm773_vm7, %v771_v24 }
 0x1ff   : > { %v793_v25 = vpop.permute.xlu1 %792 }
 0x200   : > { %796 = vst.msk [vmem:[%s1470_s12] sm:$0xff] %vm795_vm8, %v793_v25 }
 0x203   : > { %v815_v26 = vpop.permute.xlu1 %814 }
 0x204   : > { %818 = vst.msk [vmem:[%s1470_s12] sm:$0xff] %vm817_vm9, %v815_v26 }
 0x207   : > { %v837_v27 = vpop.permute.xlu1 %836 }
 0x208   : > { %840 = vst.msk [vmem:[%s1470_s12] sm:$0xff] %vm839_vm10, %v837_v27 }
 0x20b   : > { %v859_v28 = vpop.permute.xlu1 %858 }
 0x20c   : > { %862 = vst.msk [vmem:[%s1470_s12] sm:$0xff] %vm861_vm11, %v859_v28 }
 0x20f   : > { %v881_v29 = vpop.permute.xlu1 %880 }
 0x210   : > { %884 = vst.msk [vmem:[%s1470_s12] sm:$0xff] %vm883_vm12, %v881_v29 }
 0x213   : > { %v903_v30 = vpop.permute.xlu1 %902 }
 0x214   : > { %906 = vst.msk [vmem:[%s1470_s12] sm:$0xff] %vm905_vm13, %v903_v30 }
 0x217   : > { %v925_v31 = vpop.permute.xlu1 %924 }
 0x218   : > { %928 = vst.msk [vmem:[%s1470_s12] sm:$0xff] %vm927_vm14, %v925_v31 }
 0x21b   : > { %v947_v32 = vpop.permute.xlu1 %946 }
 0x21c   : > { %950 = vst.msk [vmem:[%s1470_s12] sm:$0xff] %vm949_vm15, %v947_v32 }
 0x21d   : > { %1201 = shalt.err (!%p1198_p6)
}
 0x21e   : > { %s1202_s24 = scalar_lea.hbm %s1509_s27, 128  ;;  %s1206_s5 = scalar_lea.hbm %s1560_s1, 256 }
 0x21f   : > { %p1203_p4 = scmp.ne.s32.totalorder %s1509_s27, %s1202_s24  ;;  %p1207_p1 = scmp.lt.u32.totalorder %s1509_s27, %s1560_s1 }
 0x220   : > { %p1208_p2 = scmp.lt.u32.totalorder %s1206_s5, %s1202_s24  ;;  %p1210_p8 = scmp.lt.u32.totalorder %s1202_s24, %s1509_s27 }
 0x221   : > { %p1204_p10 = pnand %p1203_p4, %p1569_p9 }
 0x222   : > { %p1209_p5 = por %p1208_p2, %p1207_p1 }
 0x223   : > { %p1205_p12 = pneg %p1204_p10 }
 0x224   : > { %p1211_p11 = por %p1210_p8, %p1209_p5 }
 0x226   : > { %p1212_p0 = pnand %p1211_p11, %p1205_p12 }
 0x228   : > { %1215 = shalt.err (!%p1212_p0)
}
 0x229   : > { %1065 = dma.vmem_to_hbm [thread:$0]  (%p1569_p9), %s1511_s26, 128, %s1509_s27, %s952_s29  }
 0x22a PF: > { %s978_s16 = sand.u32 1, %s1250_s6   ;;  %p1570_p7 = scmp.ne.s32.totalorder %s1565_s21, 0 }
 0x22b   : > { %p1571_p13 = scmp.ge.s32.totalorder %s1270_s11, 2  ;;  %s979_s17 = scalar_lea.sflag [#allocation5], %s978_s16 }
 0x22d   : > { %p1072_p3 = pnand %p1571_p13, %p1570_p7 }
 0x22f   : > { %1245 = dma.done.wait (!%p1072_p3), %s979_s17, 128  }
 0x230   : > { %1247 = vsyncadd (!%p1072_p3), %s979_s17, 4294967168  ;;  %s17_s11 = sadd.s32 1, %s1270_s11   ;;  %s1572_s6 = smov %s1254_s7 }
 0x231   : > { %p14_p6 = scmp.ge.s32.totalorder %s17_s11, 4   ;;  %s1573_s7 = smov %s1258_s8 }
 0x232   : > { %s1574_s8 = smov %s1371_s20  ;;  %s1575_s9 = smov %s1266_s10 }
 0x233   : > { %s1576_s10 = smov %s1578_s14  ;;  %16 = sbr.rel (!%p14_p6) target bundleno = 6 (0x6), region = 100 }
 0x23a   :  { %984 = vsyncpa [#allocation4], 1 }
 0x23b   :  { %986 = vsyncpa [#allocation4 + $0x1], 1 }
 0x23c   :  { %987 = vsyncpa [#allocation5], 1 }
 0x23d   :  { %989 = vsyncpa [#allocation5 + $0x1], 1 }

</bundles_post_ra>
